<compile_context>
chip_gen: v7x
topology: tpu7x:2x2x1
jax: 0.10.0
libtpu: 0.0.40
codegen_flags: <defaults>
</compile_context>

<pallas_src>
import functools

import jax
import jax.numpy as jnp
from jax import lax
from jax.experimental import pallas as pl
from jax.experimental.pallas import tpu as pltpu

CURV_K = 1.0     # Lorentz curvature: time = sqrt(1/k + ||space||^2)
LN_EPS = 1e-5
EPS = 1e-6


def _vmem_limit_bytes():
    """Generation-aware VMEM budget: ~75% of physical VMEM, capped at 100 MiB."""
    cap = 128 * 1024 * 1024
    try:
        cap = int(pltpu.get_tpu_info().vmem_capacity_bytes)
    except Exception:
        pass
    return int(min(cap * 3 // 4, 100 * 1024 * 1024))


VMEM_LIMIT = _vmem_limit_bytes()


# -----------------------------------------------------------------------------------------
# small helpers
# -----------------------------------------------------------------------------------------
def _pick_tile(m, target=512):
    """Largest row-tile that divides m and is a multiple of 8 (or the full extent)."""
    if m <= target:
        return m
    for t in (target, 256, 128, 64, 32, 16, 8):
        if m % t == 0:
            return t
    return m


def _cparams(grid_rank):
    return pltpu.CompilerParams(
        dimension_semantics=("parallel",) * grid_rank,
        vmem_limit_bytes=VMEM_LIMIT,
    )


def _tok_spec(S, D):
    return pl.BlockSpec((1, S, D), lambda b: (b, 0, 0))


def _bcast_spec(shape):
    n = len(shape)
    return pl.BlockSpec(shape, lambda *_: (0,) * n)


def _time(s):
    """Lorentz time coordinate from the space coordinates (f32 stats)."""
    return jnp.sqrt(1.0 / CURV_K + jnp.sum(s * s, axis=-1, keepdims=True))


def _layernorm_space(s, g, b):
    mu = jnp.mean(s, axis=-1, keepdims=True)
    var = jnp.mean((s - mu) * (s - mu), axis=-1, keepdims=True)
    return (s - mu) * lax.rsqrt(var + LN_EPS) * g + b


# -----------------------------------------------------------------------------------------
# Pallas kernels
# -----------------------------------------------------------------------------------------
def _patch_embed_kernel(x_ref, w_ref, o_ref):
    """Patch embedding: unfold(NCHW) @ conv-weight (bias=False). Inputs already bf16."""
    o_ref[...] = jnp.dot(x_ref[...], w_ref[...], preferred_element_type=jnp.float32)


def _attn_layer_kernel(x_ref, g_ref, b_ref,
                       qkv_ws_ref, qkv_wt_ref, qkv_b_ref,
                       o_ws_ref, o_wt_ref, o_b_ref, o_ref,
                       *, num_heads, scale, hidden):
    """Fused LN1 + Q/K/V projection + per-head attention + Lorentz centroid
    + out_proj + residual, one batch element per grid step."""
    x = x_ref[0]                                                  # [S, D] residual (space)
    sn = _layernorm_space(x, g_ref[...], b_ref[...])
    t = _time(sn)                                                 # [S, 1] implicit time
    sn_b = sn.astype(jnp.bfloat16)

    # One fused Q/K/V projection: [S, D] @ [D, 3D] + rank-1 time update + bias.
    qkv = (jnp.dot(sn_b, qkv_ws_ref[...], preferred_element_type=jnp.float32)
           + t * qkv_wt_ref[...] + qkv_b_ref[...])               # [S, 3D] f32
    D = hidden
    q = qkv[:, :D]
    k = qkv[:, D:2 * D]
    v = qkv[:, 2 * D:]

    Dh = D // num_heads
    dn = (((1,), (1,)), ((), ()))                                 # contract last dims (q @ k^T)

    space_parts = []
    time_parts = []
    for h in range(num_heads):                                    # static, unrolled
        lo = h * Dh
        qh = q[:, lo:lo + Dh].astype(jnp.bfloat16)
        kh = k[:, lo:lo + Dh].astype(jnp.bfloat16)
        vh = v[:, lo:lo + Dh]

        scores = lax.dot_general(qh, kh, dn,
                                 preferred_element_type=jnp.float32) * scale
        smax = jnp.max(scores, axis=-1, keepdims=True)
        p = jnp.exp(scores - smax)
        p = p * pl.reciprocal(jnp.sum(p, axis=-1, keepdims=True), approx=True)

        # Fuse the weighted-time reduction into the P @ V matmul (extra column).
        vt = _time(vh)                                            # [S, 1] per-head time
        vh_aug = jnp.concatenate([vh, vt], axis=-1).astype(jnp.bfloat16)   # [S, Dh+1]
        m = jnp.dot(p.astype(jnp.bfloat16), vh_aug,
                    preferred_element_type=jnp.float32)           # [S, Dh+1]
        m_s = m[:, :Dh]
        m_t = m[:, Dh:Dh + 1]

        # Lorentz centroid: rescale so <o, o>_L = -1/k
        inner = jnp.sum(m_s * m_s, axis=-1, keepdims=True) - m_t * m_t
        inv = lax.rsqrt(jnp.maximum(CURV_K * (-inner), EPS))
        out_s = m_s * inv                                         # centroid space [S, Dh]
        space_parts.append(out_s)
        time_parts.append(_time(out_s))                           # on-manifold time [S, 1]

    out_space = jnp.concatenate(space_parts, axis=-1)             # [S, D]
    out_time = jnp.concatenate(time_parts, axis=-1)               # [S, H]

    # Single [S,D] @ [D,D] out_proj matmul + single [S,H] @ [H,D] time update + residual.
    acc = (x + o_b_ref[...]
           + jnp.dot(out_space.astype(jnp.bfloat16), o_ws_ref[...],
                     preferred_element_type=jnp.float32)
           + jnp.dot(out_time.astype(jnp.bfloat16),
                     o_wt_ref[...].astype(jnp.bfloat16),
                     preferred_element_type=jnp.float32))
    o_ref[0] = acc


def _mlp_kernel(x_ref, g_ref, b_ref,
                w1s_ref, w1t_ref, b1_ref,
                w2s_ref, w2t_ref, b2_ref, o_ref):
    """Fused LorentzLayerNorm + fc1(+quick_gelu) + fc2 + residual, S-row-tiled."""
    s = x_ref[0]                                                  # [TS, D] residual (space)
    sn = _layernorm_space(s, g_ref[...], b_ref[...])
    t = _time(sn)

    h1 = (jnp.dot(sn.astype(jnp.bfloat16), w1s_ref[...], preferred_element_type=jnp.float32)
          + t * w1t_ref[...] + b1_ref[...])
    # TODO(synk): CLIP's default hidden_act is quick_gelu; swap for jax.nn.gelu if the
    # target checkpoint uses "gelu".
    h1 = h1 * jax.nn.sigmoid(1.702 * h1)
    t1 = _time(h1)
    h2 = (jnp.dot(h1.astype(jnp.bfloat16), w2s_ref[...], preferred_element_type=jnp.float32)
          + t1 * w2t_ref[...] + b2_ref[...])
    o_ref[0] = s + h2


def _lift_kernel(x_ref, o_ref):
    """Attach the Lorentz time coordinate: [M, D] space -> [M, D+1] point on manifold."""
    s = x_ref[...]
    o_ref[...] = jnp.concatenate([_time(s), s], axis=-1)


def _post_ln_kernel(x_ref, g_ref, b_ref, o_ref):
    """post_layernorm on the pooled token: LN over space, recompute time, emit [B, D+1]."""
    sn = _layernorm_space(x_ref[...], g_ref[...], b_ref[...])
    o_ref[...] = jnp.concatenate([_time(sn), sn], axis=-1)


# -----------------------------------------------------------------------------------------
# pallas_call wrappers
# -----------------------------------------------------------------------------------------
def patch_embed(patches_bf16, w):
    M, K = patches_bf16.shape
    _, D = w.shape
    TM = _pick_tile(M)
    return pl.pallas_call(
        _patch_embed_kernel,
        out_shape=jax.ShapeDtypeStruct((M, D), jnp.float32),
        grid=(M // TM,),
        in_specs=[pl.BlockSpec((TM, K), lambda i: (i, 0)),
                  pl.BlockSpec((K, D), lambda i: (0, 0))],
        out_specs=pl.BlockSpec((TM, D), lambda i: (i, 0)),
        compiler_params=_cparams(1),
    )(patches_bf16, w)


def attn_layer(h, lp, num_heads):
    B, S, D = h.shape
    Dh = D // num_heads
    tok = _tok_spec(S, D)
    kern = functools.partial(_attn_layer_kernel, num_heads=num_heads,
                             scale=float(Dh) ** -0.5, hidden=D)
    return pl.pallas_call(
        kern,
        out_shape=jax.ShapeDtypeStruct((B, S, D), jnp.float32),
        grid=(B,),
        in_specs=[tok,
                  _bcast_spec((1, D)), _bcast_spec((1, D)),
                  _bcast_spec((D, 3 * D)), _bcast_spec((1, 3 * D)), _bcast_spec((1, 3 * D)),
                  _bcast_spec((D, D)), _bcast_spec((num_heads, D)), _bcast_spec((1, D))],
        out_specs=tok,
        compiler_params=_cparams(1),
    )(h, lp["ln1_g"], lp["ln1_b"],
      lp["qkv_ws"], lp["qkv_wt"], lp["qkv_b"],
      lp["o_ws"], lp["o_wt"], lp["o_b"])


def mlp_block(h, lp, intermediate):
    B, S, D = h.shape
    I = intermediate
    TS = _pick_tile(S, 256)     # row tile keeps the [TS, I] f32 intermediate VMEM-friendly
    tok = pl.BlockSpec((1, TS, D), lambda b, s: (b, s, 0))
    return pl.pallas_call(
        _mlp_kernel,
        out_shape=jax.ShapeDtypeStruct((B, S, D), jnp.float32),
        grid=(B, S // TS),
        in_specs=[tok,
                  _bcast_spec((1, D)), _bcast_spec((1, D)),
                  _bcast_spec((D, I)), _bcast_spec((1, I)), _bcast_spec((1, I)),
                  _bcast_spec((I, D)), _bcast_spec((1, D)), _bcast_spec((1, D))],
        out_specs=tok,
        compiler_params=_cparams(2),
    )(h, lp["ln2_g"], lp["ln2_b"],
      lp["fc1_ws"], lp["fc1_wt"], lp["fc1_b"],
      lp["fc2_ws"], lp["fc2_wt"], lp["fc2_b"])


def lorentz_lift(x):
    M, D = x.shape
    TM = _pick_tile(M)
    return pl.pallas_call(
        _lift_kernel,
        out_shape=jax.ShapeDtypeStruct((M, D + 1), jnp.float32),
        grid=(M // TM,),
        in_specs=[pl.BlockSpec((TM, D), lambda i: (i, 0))],
        out_specs=pl.BlockSpec((TM, D + 1), lambda i: (i, 0)),
        compiler_params=_cparams(1),
    )(x)


def post_layernorm_pooled(x, g, b):
    B, D = x.shape
    return pl.pallas_call(
        _post_ln_kernel,
        out_shape=jax.ShapeDtypeStruct((B, D + 1), jnp.float32),
    )(x, g, b)


# -----------------------------------------------------------------------------------------
# Model
# -----------------------------------------------------------------------------------------
def init_params(key, cfg):
    D = cfg["hidden_size"]
    C = cfg["num_channels"]
    P = cfg["patch_size"]
    I = cfg["intermediate_size"]
    Hh = cfg["num_heads"]
    N = (cfg["image_size"] // P) ** 2

    keys = iter(jax.random.split(key, 8 + 16 * cfg["num_layers"]))

    def nrm(shape, std=0.02, dtype=jnp.float32):
        return (std * jax.random.normal(next(keys), shape)).astype(dtype)

    params = {
        # Conv2d(C, D, P, stride=P, bias=False) as an unfold + matmul (bf16 MXU operand)
        "patch_w": nrm((C * P * P, D), dtype=jnp.bfloat16),
        "class_embedding": nrm((D,)),
        "position_embedding": nrm((N + 1, D)),
        "post_ln_g": jnp.ones((1, D), jnp.float32),
        "post_ln_b": jnp.zeros((1, D), jnp.float32),
        "layers": [],
    }
    for _ in range(cfg["num_layers"]):
        # Each LorentzLinear weight (D+1, N) is split into: space block (bf16, MXU) and a
        # time row (f32, rank-1 VPU update with the recomputed time coordinate).
        # Q/K/V space weights are concatenated into one [D, 3D] block.
        lp = {
            "ln1_g": jnp.ones((1, D), jnp.float32), "ln1_b": jnp.zeros((1, D), jnp.float32),
            "qkv_ws": nrm((D, 3 * D), dtype=jnp.bfloat16),
            "qkv_wt": nrm((1, 3 * D)),
            "qkv_b": jnp.zeros((1, 3 * D), jnp.float32),
            # out_proj weight (Hh*(Dh+1), D) split into per-head space rows and time rows
            "o_ws": nrm((D, D), dtype=jnp.bfloat16), "o_wt": nrm((Hh, D)),
            "o_b": jnp.zeros((1, D), jnp.float32),
            "ln2_g": jnp.ones((1, D), jnp.float32), "ln2_b": jnp.zeros((1, D), jnp.float32),
            "fc1_ws": nrm((D, I), dtype=jnp.bfloat16), "fc1_wt": nrm((1, I)),
            "fc1_b": jnp.zeros((1, I), jnp.float32),
            "fc2_ws": nrm((I, D), dtype=jnp.bfloat16), "fc2_wt": nrm((1, D)),
            "fc2_b": jnp.zeros((1, D), jnp.float32),
        }
        params["layers"].append(lp)
    return params


def hyp_clip_vision_forward(params, pixel_values, *, cfg):
    """Returns (last_hidden_state [B,S,D+1], pooled_output [B,D+1]) like return_dict=False."""
    B, C, H, W = pixel_values.shape
    P = cfg["patch_size"]
    D = cfg["hidden_size"]
    nh, nw = H // P, W // P
    N = nh * nw

    # HybridCLIPVisionEmbeddings: patch conv (stride=P, bias=False) == unfold + matmul.
    # Patches are pre-cast to bf16 so the dominant HBM->VMEM DMA is halved.
    patches = pixel_values.reshape(B, C, nh, P, nw, P)
    patches = patches.transpose(0, 2, 4, 1, 3, 5).reshape(B * N, C * P * P)
    patches = patches.astype(jnp.bfloat16)
    patch_embeds = patch_embed(patches, params["patch_w"]).reshape(B, N, D)

    class_embeds = jnp.broadcast_to(params["class_embedding"], (B, 1, D))
    embeds = jnp.concatenate([class_embeds, patch_embeds], axis=1)
    embeds = embeds + params["position_embedding"][None]

    # Space-only Lorentz representation; the time coordinate is implicit and recomputed
    # inside every kernel (the explicit lift to [*, D+1] only happens for the outputs).
    h = embeds                                                    # [B, S, D]

    # HypCLIPEncoder: 2 fused pallas_calls per layer (attention block, MLP block)
    for lp in params["layers"]:
        h = attn_layer(h, lp, cfg["num_heads"])
        h = mlp_block(h, lp, cfg["intermediate_size"])

    B_, S_, _ = h.shape
    last_hidden_state = lorentz_lift(h.reshape(B_ * S_, D)).reshape(B_, S_, D + 1)
    pooled_output = post_layernorm_pooled(h[:, 0, :], params["post_ln_g"], params["post_ln_b"])
    return last_hidden_state, pooled_output


# -----------------------------------------------------------------------------------------
if __name__ == "__main__":
    cfg = dict(
        hidden_size=32,
        image_size=16,
        patch_size=8,
        num_channels=3,
        num_heads=2,
        num_layers=2,
        intermediate_size=64,
    )
    key = jax.random.PRNGKey(0)
    pkey, xkey = jax.random.split(key)
    params = init_params(pkey, cfg)
    pixel_values = jax.random.normal(
        xkey, (2, cfg["num_channels"], cfg["image_size"], cfg["image_size"]), jnp.float32)

    fwd = jax.jit(functools.partial(hyp_clip_vision_forward, cfg=cfg))
    last_hidden_state, pooled_output = fwd(params, pixel_values)
    jax.block_until_ready((last_hidden_state, pooled_output))

    # mirror manifold.assert_check_point_on_manifold: <x, x>_L == -1/k
    def lorentz_inner(x):
        return -x[..., :1] * x[..., :1] + jnp.sum(x[..., 1:] * x[..., 1:], axis=-1, keepdims=True)

    assert last_hidden_state.shape == (2, 5, cfg["hidden_size"] + 1)
    assert pooled_output.shape == (2, cfg["hidden_size"] + 1)
    assert jnp.allclose(lorentz_inner(last_hidden_state), -1.0 / CURV_K, atol=1e-3)
    assert jnp.allclose(lorentz_inner(pooled_output), -1.0 / CURV_K, atol=1e-3)
    # TODO(synk): exact HybridCLIPVisionEmbeddings / HypCLIPEncoder source not provided;
    # Lorentz ops reconstructed from the standard CustomLorentz (k=1) formulation.
    print("KERNEL_OK")
</pallas_src>

<mosaic_0001>
module attributes {stable_mosaic.version = 11 : i64} {
  func.func @_patch_embed_kernel(%arg0: i32, %arg1: memref<8x192xbf16, #tpu.memory_space<vmem>>, %arg2: memref<192x32xbf16, #tpu.memory_space<vmem>>, %arg3: memref<8x32xf32, #tpu.memory_space<vmem>>) attributes {dimension_semantics = [#tpu.dimension_semantics<parallel>], iteration_bounds = array<i64: 1>, scalar_prefetch = 0 : i64, scratch_operands = 0 : i64, tpu.core_type = #tpu.core_type<tc>, window_params = [{transform_indices = @transform_0, window_bounds = array<i64: 8, 192>}, {pipeline_mode = #tpu.pipeline_mode<synchronous>, transform_indices = @transform_1, window_bounds = array<i64: 192, 32>}, {transform_indices = @transform_2, window_bounds = array<i64: 8, 32>}]} {
    %c0 = arith.constant 0 : index
    %c0_0 = arith.constant 0 : index
    %0 = vector.load %arg1[%c0, %c0_0] : memref<8x192xbf16, #tpu.memory_space<vmem>>, vector<8x192xbf16>
    %c0_1 = arith.constant 0 : index
    %c0_2 = arith.constant 0 : index
    %1 = vector.load %arg2[%c0_1, %c0_2] : memref<192x32xbf16, #tpu.memory_space<vmem>>, vector<192x32xbf16>
    %cst = arith.constant dense<0.000000e+00> : vector<8x32xf32>
    %2 = tpu.matmul %0, %1, %cst {dimension_numbers = #tpu.dot_dimension_numbers<[1], [0], [0], [1], [0, 0, 1, 1], [], []>} : vector<8x192xbf16>, vector<192x32xbf16>, vector<8x32xf32> -> vector<8x32xf32>
    %c0_3 = arith.constant 0 : index
    %c0_4 = arith.constant 0 : index
    %3 = vector.load %arg3[%c0_3, %c0_4] : memref<8x32xf32, #tpu.memory_space<vmem>>, vector<8x32xf32>
    tpu.vector_store %arg3[%c0_3, %c0_4], %2 {strides = array<i32>} : memref<8x32xf32, #tpu.memory_space<vmem>>, vector<8x32xf32>,
    return
  }
  func.func @transform_0(%arg0: i32) -> (i32, i32) {
    %c0_i32 = arith.constant 0 : i32
    %c0_i32_0 = arith.constant 0 : i32
    return %arg0, %c0_i32 : i32, i32
  }
  func.func @transform_1(%arg0: i32) -> (i32, i32) {
    %c0_i32 = arith.constant 0 : i32
    %c0_i32_0 = arith.constant 0 : i32
    %c0_i32_1 = arith.constant 0 : i32
    return %c0_i32, %c0_i32_0 : i32, i32
  }
  func.func @transform_2(%arg0: i32) -> (i32, i32) {
    %c0_i32 = arith.constant 0 : i32
    %c0_i32_0 = arith.constant 0 : i32
    return %arg0, %c0_i32 : i32, i32
  }
}

module attributes {stable_mosaic.version = 11 : i64} {
  func.func @_attn_layer_kernel(%arg0: i32, %arg1: memref<1x5x32xf32, #tpu.memory_space<vmem>>, %arg2: memref<1x32xf32, #tpu.memory_space<vmem>>, %arg3: memref<1x32xf32, #tpu.memory_space<vmem>>, %arg4: memref<32x96xbf16, #tpu.memory_space<vmem>>, %arg5: memref<1x96xf32, #tpu.memory_space<vmem>>, %arg6: memref<1x96xf32, #tpu.memory_space<vmem>>, %arg7: memref<32x32xbf16, #tpu.memory_space<vmem>>, %arg8: memref<2x32xf32, #tpu.memory_space<vmem>>, %arg9: memref<1x32xf32, #tpu.memory_space<vmem>>, %arg10: memref<1x5x32xf32, #tpu.memory_space<vmem>>) attributes {dimension_semantics = [#tpu.dimension_semantics<parallel>], iteration_bounds = array<i64: 2>, scalar_prefetch = 0 : i64, scratch_operands = 0 : i64, tpu.core_type = #tpu.core_type<tc>, window_params = [{transform_indices = @transform_0, window_bounds = array<i64: 1, 5, 32>}, {pipeline_mode = #tpu.pipeline_mode<synchronous>, transform_indices = @transform_1, window_bounds = array<i64: 1, 32>}, {pipeline_mode = #tpu.pipeline_mode<synchronous>, transform_indices = @transform_2, window_bounds = array<i64: 1, 32>}, {pipeline_mode = #tpu.pipeline_mode<synchronous>, transform_indices = @transform_3, window_bounds = array<i64: 32, 96>}, {pipeline_mode = #tpu.pipeline_mode<synchronous>, transform_indices = @transform_4, window_bounds = array<i64: 1, 96>}, {pipeline_mode = #tpu.pipeline_mode<synchronous>, transform_indices = @transform_5, window_bounds = array<i64: 1, 96>}, {pipeline_mode = #tpu.pipeline_mode<synchronous>, transform_indices = @transform_6, window_bounds = array<i64: 32, 32>}, {pipeline_mode = #tpu.pipeline_mode<synchronous>, transform_indices = @transform_7, window_bounds = array<i64: 2, 32>}, {pipeline_mode = #tpu.pipeline_mode<synchronous>, transform_indices = @transform_8, window_bounds = array<i64: 1, 32>}, {transform_indices = @transform_9, window_bounds = array<i64: 1, 5, 32>}]} {
    %c0 = arith.constant 0 : index
    %c0_0 = arith.constant 0 : index
    %c0_1 = arith.constant 0 : index
    %0 = vector.load %arg1[%c0, %c0_0, %c0_1] : memref<1x5x32xf32, #tpu.memory_space<vmem>>, vector<1x5x32xf32>
    %1 = vector.shape_cast %0 : vector<1x5x32xf32> to vector<5x32xf32>
    %c0_2 = arith.constant 0 : index
    %c0_3 = arith.constant 0 : index
    %2 = vector.load %arg2[%c0_2, %c0_3] : memref<1x32xf32, #tpu.memory_space<vmem>>, vector<1x32xf32>
    %c0_4 = arith.constant 0 : index
    %c0_5 = arith.constant 0 : index
    %3 = vector.load %arg3[%c0_4, %c0_5] : memref<1x32xf32, #tpu.memory_space<vmem>>, vector<1x32xf32>
    %cst = arith.constant dense<0.000000e+00> : vector<5xf32>
    %4 = vector.multi_reduction <add>, %1, %cst [1] : vector<5x32xf32> to vector<5xf32>
    %5 = vector.shape_cast %4 : vector<5xf32> to vector<5x1xf32>
    %cst_6 = arith.constant 3.200000e+01 : f32
    %6 = vector.broadcast %cst_6 : f32 to vector<5x1xf32>
    %7 = arith.divf %5, %6 : vector<5x1xf32>
    %8 = vector.broadcast %7 : vector<5x1xf32> to vector<5x32xf32>
    %9 = arith.subf %1, %8 : vector<5x32xf32>
    %10 = vector.broadcast %7 : vector<5x1xf32> to vector<5x32xf32>
    %11 = arith.subf %1, %10 : vector<5x32xf32>
    %12 = arith.mulf %9, %11 : vector<5x32xf32>
    %cst_7 = arith.constant dense<0.000000e+00> : vector<5xf32>
    %13 = vector.multi_reduction <add>, %12, %cst_7 [1] : vector<5x32xf32> to vector<5xf32>
    %14 = vector.shape_cast %13 : vector<5xf32> to vector<5x1xf32>
    %cst_8 = arith.constant 3.200000e+01 : f32
    %15 = vector.broadcast %cst_8 : f32 to vector<5x1xf32>
    %16 = arith.divf %14, %15 : vector<5x1xf32>
    %17 = vector.broadcast %7 : vector<5x1xf32> to vector<5x32xf32>
    %18 = arith.subf %1, %17 : vector<5x32xf32>
    %cst_9 = arith.constant 9.99999974E-6 : f32
    %19 = vector.broadcast %cst_9 : f32 to vector<5x1xf32>
    %20 = arith.addf %16, %19 : vector<5x1xf32>
    %21 = math.rsqrt %20 : vector<5x1xf32>
    %22 = vector.broadcast %21 : vector<5x1xf32> to vector<5x32xf32>
    %23 = arith.mulf %18, %22 : vector<5x32xf32>
    %24 = vector.broadcast %2 : vector<1x32xf32> to vector<5x32xf32>
    %25 = arith.mulf %23, %24 : vector<5x32xf32>
    %26 = vector.broadcast %3 : vector<1x32xf32> to vector<5x32xf32>
    %27 = arith.addf %25, %26 : vector<5x32xf32>
    %28 = arith.mulf %27, %27 : vector<5x32xf32>
    %cst_10 = arith.constant dense<0.000000e+00> : vector<5xf32>
    %29 = vector.multi_reduction <add>, %28, %cst_10 [1] : vector<5x32xf32> to vector<5xf32>
    %30 = vector.shape_cast %29 : vector<5xf32> to vector<5x1xf32>
    %cst_11 = arith.constant 1.000000e+00 : f32
    %31 = vector.broadcast %cst_11 : f32 to vector<5x1xf32>
    %32 = arith.addf %31, %30 : vector<5x1xf32>
    %33 = math.sqrt %32 : vector<5x1xf32>
    %34 = arith.truncf %27 : vector<5x32xf32> to vector<5x32xbf16>
    %c0_12 = arith.constant 0 : index
    %c0_13 = arith.constant 0 : index
    %35 = vector.load %arg4[%c0_12, %c0_13] : memref<32x96xbf16, #tpu.memory_space<vmem>>, vector<32x96xbf16>
    %cst_14 = arith.constant dense<0.000000e+00> : vector<5x96xf32>
    %36 = tpu.matmul %34, %35, %cst_14 {dimension_numbers = #tpu.dot_dimension_numbers<[1], [0], [0], [1], [0, 0, 1, 1], [], []>} : vector<5x32xbf16>, vector<32x96xbf16>, vector<5x96xf32> -> vector<5x96xf32>
    %c0_15 = arith.constant 0 : index
    %c0_16 = arith.constant 0 : index
    %37 = vector.load %arg5[%c0_15, %c0_16] : memref<1x96xf32, #tpu.memory_space<vmem>>, vector<1x96xf32>
    %38 = vector.broadcast %33 : vector<5x1xf32> to vector<5x96xf32>
    %39 = vector.broadcast %37 : vector<1x96xf32> to vector<5x96xf32>
    %40 = arith.mulf %38, %39 : vector<5x96xf32>
    %41 = arith.addf %36, %40 : vector<5x96xf32>
    %c0_17 = arith.constant 0 : index
    %c0_18 = arith.constant 0 : index
    %42 = vector.load %arg6[%c0_17, %c0_18] : memref<1x96xf32, #tpu.memory_space<vmem>>, vector<1x96xf32>
    %43 = vector.broadcast %42 : vector<1x96xf32> to vector<5x96xf32>
    %44 = arith.addf %41, %43 : vector<5x96xf32>
    %45 = vector.extract_strided_slice %44 {offsets = [0, 0], sizes = [5, 32], strides = [1, 1]} : vector<5x96xf32> to vector<5x32xf32>
    %46 = vector.extract_strided_slice %44 {offsets = [0, 32], sizes = [5, 32], strides = [1, 1]} : vector<5x96xf32> to vector<5x32xf32>
    %47 = vector.extract_strided_slice %44 {offsets = [0, 64], sizes = [5, 32], strides = [1, 1]} : vector<5x96xf32> to vector<5x32xf32>
    %48 = vector.extract_strided_slice %45 {offsets = [0, 0], sizes = [5, 16], strides = [1, 1]} : vector<5x32xf32> to vector<5x16xf32>
    %49 = arith.truncf %48 : vector<5x16xf32> to vector<5x16xbf16>
    %50 = vector.extract_strided_slice %46 {offsets = [0, 0], sizes = [5, 16], strides = [1, 1]} : vector<5x32xf32> to vector<5x16xf32>
    %51 = arith.truncf %50 : vector<5x16xf32> to vector<5x16xbf16>
    %52 = vector.extract_strided_slice %47 {offsets = [0, 0], sizes = [5, 16], strides = [1, 1]} : vector<5x32xf32> to vector<5x16xf32>
    %cst_19 = arith.constant dense<0.000000e+00> : vector<5x5xf32>
    %53 = tpu.matmul %49, %51, %cst_19 {dimension_numbers = #tpu.dot_dimension_numbers<[1], [1], [0], [0], [0, 0, 1, 0], [], []>} : vector<5x16xbf16>, vector<5x16xbf16>, vector<5x5xf32> -> vector<5x5xf32>
    %cst_20 = arith.constant 2.500000e-01 : f32
    %54 = vector.broadcast %cst_20 : f32 to vector<5x5xf32>
    %55 = arith.mulf %53, %54 : vector<5x5xf32>
    %cst_21 = arith.constant dense<0xFF800000> : vector<5xf32>
    %56 = vector.multi_reduction <maximumf>, %55, %cst_21 [1] : vector<5x5xf32> to vector<5xf32>
    %57 = vector.shape_cast %56 : vector<5xf32> to vector<5x1xf32>
    %58 = vector.broadcast %57 : vector<5x1xf32> to vector<5x5xf32>
    %59 = arith.subf %55, %58 : vector<5x5xf32>
    %60 = math.exp %59 : vector<5x5xf32>
    %cst_22 = arith.constant dense<0.000000e+00> : vector<5xf32>
    %61 = vector.multi_reduction <add>, %60, %cst_22 [1] : vector<5x5xf32> to vector<5xf32>
    %62 = vector.shape_cast %61 : vector<5xf32> to vector<5x1xf32>
    %63 = tpu.reciprocal %62 {approx = true} : vector<5x1xf32> -> vector<5x1xf32>
    %64 = vector.broadcast %63 : vector<5x1xf32> to vector<5x5xf32>
    %65 = arith.mulf %60, %64 : vector<5x5xf32>
    %66 = arith.mulf %52, %52 : vector<5x16xf32>
    %cst_23 = arith.constant dense<0.000000e+00> : vector<5xf32>
    %67 = vector.multi_reduction <add>, %66, %cst_23 [1] : vector<5x16xf32> to vector<5xf32>
    %68 = vector.shape_cast %67 : vector<5xf32> to vector<5x1xf32>
    %cst_24 = arith.constant 1.000000e+00 : f32
    %69 = vector.broadcast %cst_24 : f32 to vector<5x1xf32>
    %70 = arith.addf %69, %68 : vector<5x1xf32>
    %71 = math.sqrt %70 : vector<5x1xf32>
    %72 = tpu.concatenate %52, %71 in 1 : vector<5x16xf32>, vector<5x1xf32> -> vector<5x17xf32>
    %73 = arith.truncf %72 : vector<5x17xf32> to vector<5x17xbf16>
    %74 = arith.truncf %65 : vector<5x5xf32> to vector<5x5xbf16>
    %cst_25 = arith.constant dense<0.000000e+00> : vector<5x17xf32>
    %75 = tpu.matmul %74, %73, %cst_25 {dimension_numbers = #tpu.dot_dimension_numbers<[1], [0], [0], [1], [0, 0, 1, 1], [], []>} : vector<5x5xbf16>, vector<5x17xbf16>, vector<5x17xf32> -> vector<5x17xf32>
    %76 = vector.extract_strided_slice %75 {offsets = [0, 0], sizes = [5, 16], strides = [1, 1]} : vector<5x17xf32> to vector<5x16xf32>
    %77 = vector.extract_strided_slice %75 {offsets = [0, 16], sizes = [5, 1], strides = [1, 1]} : vector<5x17xf32> to vector<5x1xf32>
    %78 = arith.mulf %76, %76 : vector<5x16xf32>
    %cst_26 = arith.constant dense<0.000000e+00> : vector<5xf32>
    %79 = vector.multi_reduction <add>, %78, %cst_26 [1] : vector<5x16xf32> to vector<5xf32>
    %80 = vector.shape_cast %79 : vector<5xf32> to vector<5x1xf32>
    %81 = arith.mulf %77, %77 : vector<5x1xf32>
    %82 = arith.subf %80, %81 : vector<5x1xf32>
    %cst_27 = arith.constant 0.000000e+00 : f32
    %83 = vector.broadcast %cst_27 : f32 to vector<5x1xf32>
    %84 = arith.subf %83, %82 : vector<5x1xf32>
    %cst_28 = arith.constant 1.000000e+00 : f32
    %85 = vector.broadcast %cst_28 : f32 to vector<5x1xf32>
    %86 = arith.mulf %85, %84 : vector<5x1xf32>
    %cst_29 = arith.constant 9.99999997E-7 : f32
    %87 = vector.broadcast %cst_29 : f32 to vector<5x1xf32>
    %88 = arith.maximumf %86, %87 : vector<5x1xf32>
    %89 = math.rsqrt %88 : vector<5x1xf32>
    %90 = vector.broadcast %89 : vector<5x1xf32> to vector<5x16xf32>
    %91 = arith.mulf %76, %90 : vector<5x16xf32>
    %92 = arith.mulf %91, %91 : vector<5x16xf32>
    %cst_30 = arith.constant dense<0.000000e+00> : vector<5xf32>
    %93 = vector.multi_reduction <add>, %92, %cst_30 [1] : vector<5x16xf32> to vector<5xf32>
    %94 = vector.shape_cast %93 : vector<5xf32> to vector<5x1xf32>
    %cst_31 = arith.constant 1.000000e+00 : f32
    %95 = vector.broadcast %cst_31 : f32 to vector<5x1xf32>
    %96 = arith.addf %95, %94 : vector<5x1xf32>
    %97 = math.sqrt %96 : vector<5x1xf32>
    %98 = vector.extract_strided_slice %45 {offsets = [0, 16], sizes = [5, 16], strides = [1, 1]} : vector<5x32xf32> to vector<5x16xf32>
    %99 = arith.truncf %98 : vector<5x16xf32> to vector<5x16xbf16>
    %100 = vector.extract_strided_slice %46 {offsets = [0, 16], sizes = [5, 16], strides = [1, 1]} : vector<5x32xf32> to vector<5x16xf32>
    %101 = arith.truncf %100 : vector<5x16xf32> to vector<5x16xbf16>
    %102 = vector.extract_strided_slice %47 {offsets = [0, 16], sizes = [5, 16], strides = [1, 1]} : vector<5x32xf32> to vector<5x16xf32>
    %cst_32 = arith.constant dense<0.000000e+00> : vector<5x5xf32>
    %103 = tpu.matmul %99, %101, %cst_32 {dimension_numbers = #tpu.dot_dimension_numbers<[1], [1], [0], [0], [0, 0, 1, 0], [], []>} : vector<5x16xbf16>, vector<5x16xbf16>, vector<5x5xf32> -> vector<5x5xf32>
    %cst_33 = arith.constant 2.500000e-01 : f32
    %104 = vector.broadcast %cst_33 : f32 to vector<5x5xf32>
    %105 = arith.mulf %103, %104 : vector<5x5xf32>
    %cst_34 = arith.constant dense<0xFF800000> : vector<5xf32>
    %106 = vector.multi_reduction <maximumf>, %105, %cst_34 [1] : vector<5x5xf32> to vector<5xf32>
    %107 = vector.shape_cast %106 : vector<5xf32> to vector<5x1xf32>
    %108 = vector.broadcast %107 : vector<5x1xf32> to vector<5x5xf32>
    %109 = arith.subf %105, %108 : vector<5x5xf32>
    %110 = math.exp %109 : vector<5x5xf32>
    %cst_35 = arith.constant dense<0.000000e+00> : vector<5xf32>
    %111 = vector.multi_reduction <add>, %110, %cst_35 [1] : vector<5x5xf32> to vector<5xf32>
    %112 = vector.shape_cast %111 : vector<5xf32> to vector<5x1xf32>
    %113 = tpu.reciprocal %112 {approx = true} : vector<5x1xf32> -> vector<5x1xf32>
    %114 = vector.broadcast %113 : vector<5x1xf32> to vector<5x5xf32>
    %115 = arith.mulf %110, %114 : vector<5x5xf32>
    %116 = arith.mulf %102, %102 : vector<5x16xf32>
    %cst_36 = arith.constant dense<0.000000e+00> : vector<5xf32>
    %117 = vector.multi_reduction <add>, %116, %cst_36 [1] : vector<5x16xf32> to vector<5xf32>
    %118 = vector.shape_cast %117 : vector<5xf32> to vector<5x1xf32>
    %cst_37 = arith.constant 1.000000e+00 : f32
    %119 = vector.broadcast %cst_37 : f32 to vector<5x1xf32>
    %120 = arith.addf %119, %118 : vector<5x1xf32>
    %121 = math.sqrt %120 : vector<5x1xf32>
    %122 = tpu.concatenate %102, %121 in 1 : vector<5x16xf32>, vector<5x1xf32> -> vector<5x17xf32>
    %123 = arith.truncf %122 : vector<5x17xf32> to vector<5x17xbf16>
    %124 = arith.truncf %115 : vector<5x5xf32> to vector<5x5xbf16>
    %cst_38 = arith.constant dense<0.000000e+00> : vector<5x17xf32>
    %125 = tpu.matmul %124, %123, %cst_38 {dimension_numbers = #tpu.dot_dimension_numbers<[1], [0], [0], [1], [0, 0, 1, 1], [], []>} : vector<5x5xbf16>, vector<5x17xbf16>, vector<5x17xf32> -> vector<5x17xf32>
    %126 = vector.extract_strided_slice %125 {offsets = [0, 0], sizes = [5, 16], strides = [1, 1]} : vector<5x17xf32> to vector<5x16xf32>
    %127 = vector.extract_strided_slice %125 {offsets = [0, 16], sizes = [5, 1], strides = [1, 1]} : vector<5x17xf32> to vector<5x1xf32>
    %128 = arith.mulf %126, %126 : vector<5x16xf32>
    %cst_39 = arith.constant dense<0.000000e+00> : vector<5xf32>
    %129 = vector.multi_reduction <add>, %128, %cst_39 [1] : vector<5x16xf32> to vector<5xf32>
    %130 = vector.shape_cast %129 : vector<5xf32> to vector<5x1xf32>
    %131 = arith.mulf %127, %127 : vector<5x1xf32>
    %132 = arith.subf %130, %131 : vector<5x1xf32>
    %cst_40 = arith.constant 0.000000e+00 : f32
    %133 = vector.broadcast %cst_40 : f32 to vector<5x1xf32>
    %134 = arith.subf %133, %132 : vector<5x1xf32>
    %cst_41 = arith.constant 1.000000e+00 : f32
    %135 = vector.broadcast %cst_41 : f32 to vector<5x1xf32>
    %136 = arith.mulf %135, %134 : vector<5x1xf32>
    %cst_42 = arith.constant 9.99999997E-7 : f32
    %137 = vector.broadcast %cst_42 : f32 to vector<5x1xf32>
    %138 = arith.maximumf %136, %137 : vector<5x1xf32>
    %139 = math.rsqrt %138 : vector<5x1xf32>
    %140 = vector.broadcast %139 : vector<5x1xf32> to vector<5x16xf32>
    %141 = arith.mulf %126, %140 : vector<5x16xf32>
    %142 = arith.mulf %141, %141 : vector<5x16xf32>
    %cst_43 = arith.constant dense<0.000000e+00> : vector<5xf32>
    %143 = vector.multi_reduction <add>, %142, %cst_43 [1] : vector<5x16xf32> to vector<5xf32>
    %144 = vector.shape_cast %143 : vector<5xf32> to vector<5x1xf32>
    %cst_44 = arith.constant 1.000000e+00 : f32
    %145 = vector.broadcast %cst_44 : f32 to vector<5x1xf32>
    %146 = arith.addf %145, %144 : vector<5x1xf32>
    %147 = math.sqrt %146 : vector<5x1xf32>
    %148 = tpu.concatenate %91, %141 in 1 : vector<5x16xf32>, vector<5x16xf32> -> vector<5x32xf32>
    %149 = tpu.concatenate %97, %147 in 1 : vector<5x1xf32>, vector<5x1xf32> -> vector<5x2xf32>
    %c0_45 = arith.constant 0 : index
    %c0_46 = arith.constant 0 : index
    %150 = vector.load %arg9[%c0_45, %c0_46] : memref<1x32xf32, #tpu.memory_space<vmem>>, vector<1x32xf32>
    %151 = vector.broadcast %150 : vector<1x32xf32> to vector<5x32xf32>
    %152 = arith.addf %1, %151 : vector<5x32xf32>
    %153 = arith.truncf %148 : vector<5x32xf32> to vector<5x32xbf16>
    %c0_47 = arith.constant 0 : index
    %c0_48 = arith.constant 0 : index
    %154 = vector.load %arg7[%c0_47, %c0_48] : memref<32x32xbf16, #tpu.memory_space<vmem>>, vector<32x32xbf16>
    %cst_49 = arith.constant dense<0.000000e+00> : vector<5x32xf32>
    %155 = tpu.matmul %153, %154, %cst_49 {dimension_numbers = #tpu.dot_dimension_numbers<[1], [0], [0], [1], [0, 0, 1, 1], [], []>} : vector<5x32xbf16>, vector<32x32xbf16>, vector<5x32xf32> -> vector<5x32xf32>
    %156 = arith.addf %152, %155 : vector<5x32xf32>
    %157 = arith.truncf %149 : vector<5x2xf32> to vector<5x2xbf16>
    %c0_50 = arith.constant 0 : index
    %c0_51 = arith.constant 0 : index
    %158 = vector.load %arg8[%c0_50, %c0_51] : memref<2x32xf32, #tpu.memory_space<vmem>>, vector<2x32xf32>
    %159 = arith.truncf %158 : vector<2x32xf32> to vector<2x32xbf16>
    %cst_52 = arith.constant dense<0.000000e+00> : vector<5x32xf32>
    %160 = tpu.matmul %157, %159, %cst_52 {dimension_numbers = #tpu.dot_dimension_numbers<[1], [0], [0], [1], [0, 0, 1, 1], [], []>} : vector<5x2xbf16>, vector<2x32xbf16>, vector<5x32xf32> -> vector<5x32xf32>
    %161 = arith.addf %156, %160 : vector<5x32xf32>
    %c0_53 = arith.constant 0 : index
    %c0_54 = arith.constant 0 : index
    %c0_55 = arith.constant 0 : index
    %162 = vector.load %arg10[%c0_53, %c0_54, %c0_55] : memref<1x5x32xf32, #tpu.memory_space<vmem>>, vector<1x5x32xf32>
    %163 = vector.shape_cast %162 : vector<1x5x32xf32> to vector<5x32xf32>
    %164 = vector.shape_cast %161 : vector<5x32xf32> to vector<1x5x32xf32>
    tpu.vector_store %arg10[%c0_53, %c0_54, %c0_55], %164 {strides = array<i32>} : memref<1x5x32xf32, #tpu.memory_space<vmem>>, vector<1x5x32xf32>,
    return
  }
  func.func @transform_0(%arg0: i32) -> (i32, i32, i32) {
    %c0_i32 = arith.constant 0 : i32
    %c0_i32_0 = arith.constant 0 : i32
    %c0_i32_1 = arith.constant 0 : i32
    return %arg0, %c0_i32, %c0_i32_0 : i32, i32, i32
  }
  func.func @transform_1(%arg0: i32) -> (i32, i32) {
    %c0_i32 = arith.constant 0 : i32
    %c0_i32_0 = arith.constant 0 : i32
    %c0_i32_1 = arith.constant 0 : i32
    return %c0_i32, %c0_i32_0 : i32, i32
  }
  func.func @transform_2(%arg0: i32) -> (i32, i32) {
    %c0_i32 = arith.constant 0 : i32
    %c0_i32_0 = arith.constant 0 : i32
    %c0_i32_1 = arith.constant 0 : i32
    return %c0_i32, %c0_i32_0 : i32, i32
  }
  func.func @transform_3(%arg0: i32) -> (i32, i32) {
    %c0_i32 = arith.constant 0 : i32
    %c0_i32_0 = arith.constant 0 : i32
    %c0_i32_1 = arith.constant 0 : i32
    return %c0_i32, %c0_i32_0 : i32, i32
  }
  func.func @transform_4(%arg0: i32) -> (i32, i32) {
    %c0_i32 = arith.constant 0 : i32
    %c0_i32_0 = arith.constant 0 : i32
    %c0_i32_1 = arith.constant 0 : i32
    return %c0_i32, %c0_i32_0 : i32, i32
  }
  func.func @transform_5(%arg0: i32) -> (i32, i32) {
    %c0_i32 = arith.constant 0 : i32
    %c0_i32_0 = arith.constant 0 : i32
    %c0_i32_1 = arith.constant 0 : i32
    return %c0_i32, %c0_i32_0 : i32, i32
  }
  func.func @transform_6(%arg0: i32) -> (i32, i32) {
    %c0_i32 = arith.constant 0 : i32
    %c0_i32_0 = arith.constant 0 : i32
    %c0_i32_1 = arith.constant 0 : i32
    return %c0_i32, %c0_i32_0 : i32, i32
  }
  func.func @transform_7(%arg0: i32) -> (i32, i32) {
    %c0_i32 = arith.constant 0 : i32
    %c0_i32_0 = arith.constant 0 : i32
    %c0_i32_1 = arith.constant 0 : i32
    return %c0_i32, %c0_i32_0 : i32, i32
  }
  func.func @transform_8(%arg0: i32) -> (i32, i32) {
    %c0_i32 = arith.constant 0 : i32
    %c0_i32_0 = arith.constant 0 : i32
    %c0_i32_1 = arith.constant 0 : i32
    return %c0_i32, %c0_i32_0 : i32, i32
  }
  func.func @transform_9(%arg0: i32) -> (i32, i32, i32) {
    %c0_i32 = arith.constant 0 : i32
    %c0_i32_0 = arith.constant 0 : i32
    %c0_i32_1 = arith.constant 0 : i32
    return %arg0, %c0_i32, %c0_i32_0 : i32, i32, i32
  }
}

module attributes {stable_mosaic.version = 11 : i64} {
  func.func @_mlp_kernel(%arg0: i32, %arg1: i32, %arg2: memref<1x5x32xf32, #tpu.memory_space<vmem>>, %arg3: memref<1x32xf32, #tpu.memory_space<vmem>>, %arg4: memref<1x32xf32, #tpu.memory_space<vmem>>, %arg5: memref<32x64xbf16, #tpu.memory_space<vmem>>, %arg6: memref<1x64xf32, #tpu.memory_space<vmem>>, %arg7: memref<1x64xf32, #tpu.memory_space<vmem>>, %arg8: memref<64x32xbf16, #tpu.memory_space<vmem>>, %arg9: memref<1x32xf32, #tpu.memory_space<vmem>>, %arg10: memref<1x32xf32, #tpu.memory_space<vmem>>, %arg11: memref<1x5x32xf32, #tpu.memory_space<vmem>>) attributes {dimension_semantics = [#tpu.dimension_semantics<parallel>, #tpu.dimension_semantics<parallel>], iteration_bounds = array<i64: 2, 1>, scalar_prefetch = 0 : i64, scratch_operands = 0 : i64, tpu.core_type = #tpu.core_type<tc>, window_params = [{transform_indices = @transform_0, window_bounds = array<i64: 1, 5, 32>}, {pipeline_mode = #tpu.pipeline_mode<synchronous>, transform_indices = @transform_1, window_bounds = array<i64: 1, 32>}, {pipeline_mode = #tpu.pipeline_mode<synchronous>, transform_indices = @transform_2, window_bounds = array<i64: 1, 32>}, {pipeline_mode = #tpu.pipeline_mode<synchronous>, transform_indices = @transform_3, window_bounds = array<i64: 32, 64>}, {pipeline_mode = #tpu.pipeline_mode<synchronous>, transform_indices = @transform_4, window_bounds = array<i64: 1, 64>}, {pipeline_mode = #tpu.pipeline_mode<synchronous>, transform_indices = @transform_5, window_bounds = array<i64: 1, 64>}, {pipeline_mode = #tpu.pipeline_mode<synchronous>, transform_indices = @transform_6, window_bounds = array<i64: 64, 32>}, {pipeline_mode = #tpu.pipeline_mode<synchronous>, transform_indices = @transform_7, window_bounds = array<i64: 1, 32>}, {pipeline_mode = #tpu.pipeline_mode<synchronous>, transform_indices = @transform_8, window_bounds = array<i64: 1, 32>}, {transform_indices = @transform_9, window_bounds = array<i64: 1, 5, 32>}]} {
    %c0 = arith.constant 0 : index
    %c0_0 = arith.constant 0 : index
    %c0_1 = arith.constant 0 : index
    %0 = vector.load %arg2[%c0, %c0_0, %c0_1] : memref<1x5x32xf32, #tpu.memory_space<vmem>>, vector<1x5x32xf32>
    %1 = vector.shape_cast %0 : vector<1x5x32xf32> to vector<5x32xf32>
    %c0_2 = arith.constant 0 : index
    %c0_3 = arith.constant 0 : index
    %2 = vector.load %arg3[%c0_2, %c0_3] : memref<1x32xf32, #tpu.memory_space<vmem>>, vector<1x32xf32>
    %c0_4 = arith.constant 0 : index
    %c0_5 = arith.constant 0 : index
    %3 = vector.load %arg4[%c0_4, %c0_5] : memref<1x32xf32, #tpu.memory_space<vmem>>, vector<1x32xf32>
    %cst = arith.constant dense<0.000000e+00> : vector<5xf32>
    %4 = vector.multi_reduction <add>, %1, %cst [1] : vector<5x32xf32> to vector<5xf32>
    %5 = vector.shape_cast %4 : vector<5xf32> to vector<5x1xf32>
    %cst_6 = arith.constant 3.200000e+01 : f32
    %6 = vector.broadcast %cst_6 : f32 to vector<5x1xf32>
    %7 = arith.divf %5, %6 : vector<5x1xf32>
    %8 = vector.broadcast %7 : vector<5x1xf32> to vector<5x32xf32>
    %9 = arith.subf %1, %8 : vector<5x32xf32>
    %10 = vector.broadcast %7 : vector<5x1xf32> to vector<5x32xf32>
    %11 = arith.subf %1, %10 : vector<5x32xf32>
    %12 = arith.mulf %9, %11 : vector<5x32xf32>
    %cst_7 = arith.constant dense<0.000000e+00> : vector<5xf32>
    %13 = vector.multi_reduction <add>, %12, %cst_7 [1] : vector<5x32xf32> to vector<5xf32>
    %14 = vector.shape_cast %13 : vector<5xf32> to vector<5x1xf32>
    %cst_8 = arith.constant 3.200000e+01 : f32
    %15 = vector.broadcast %cst_8 : f32 to vector<5x1xf32>
    %16 = arith.divf %14, %15 : vector<5x1xf32>
    %17 = vector.broadcast %7 : vector<5x1xf32> to vector<5x32xf32>
    %18 = arith.subf %1, %17 : vector<5x32xf32>
    %cst_9 = arith.constant 9.99999974E-6 : f32
    %19 = vector.broadcast %cst_9 : f32 to vector<5x1xf32>
    %20 = arith.addf %16, %19 : vector<5x1xf32>
    %21 = math.rsqrt %20 : vector<5x1xf32>
    %22 = vector.broadcast %21 : vector<5x1xf32> to vector<5x32xf32>
    %23 = arith.mulf %18, %22 : vector<5x32xf32>
    %24 = vector.broadcast %2 : vector<1x32xf32> to vector<5x32xf32>
    %25 = arith.mulf %23, %24 : vector<5x32xf32>
    %26 = vector.broadcast %3 : vector<1x32xf32> to vector<5x32xf32>
    %27 = arith.addf %25, %26 : vector<5x32xf32>
    %28 = arith.mulf %27, %27 : vector<5x32xf32>
    %cst_10 = arith.constant dense<0.000000e+00> : vector<5xf32>
    %29 = vector.multi_reduction <add>, %28, %cst_10 [1] : vector<5x32xf32> to vector<5xf32>
    %30 = vector.shape_cast %29 : vector<5xf32> to vector<5x1xf32>
    %cst_11 = arith.constant 1.000000e+00 : f32
    %31 = vector.broadcast %cst_11 : f32 to vector<5x1xf32>
    %32 = arith.addf %31, %30 : vector<5x1xf32>
    %33 = math.sqrt %32 : vector<5x1xf32>
    %34 = arith.truncf %27 : vector<5x32xf32> to vector<5x32xbf16>
    %c0_12 = arith.constant 0 : index
    %c0_13 = arith.constant 0 : index
    %35 = vector.load %arg5[%c0_12, %c0_13] : memref<32x64xbf16, #tpu.memory_space<vmem>>, vector<32x64xbf16>
    %cst_14 = arith.constant dense<0.000000e+00> : vector<5x64xf32>
    %36 = tpu.matmul %34, %35, %cst_14 {dimension_numbers = #tpu.dot_dimension_numbers<[1], [0], [0], [1], [0, 0, 1, 1], [], []>} : vector<5x32xbf16>, vector<32x64xbf16>, vector<5x64xf32> -> vector<5x64xf32>
    %c0_15 = arith.constant 0 : index
    %c0_16 = arith.constant 0 : index
    %37 = vector.load %arg6[%c0_15, %c0_16] : memref<1x64xf32, #tpu.memory_space<vmem>>, vector<1x64xf32>
    %38 = vector.broadcast %33 : vector<5x1xf32> to vector<5x64xf32>
    %39 = vector.broadcast %37 : vector<1x64xf32> to vector<5x64xf32>
    %40 = arith.mulf %38, %39 : vector<5x64xf32>
    %41 = arith.addf %36, %40 : vector<5x64xf32>
    %c0_17 = arith.constant 0 : index
    %c0_18 = arith.constant 0 : index
    %42 = vector.load %arg7[%c0_17, %c0_18] : memref<1x64xf32, #tpu.memory_space<vmem>>, vector<1x64xf32>
    %43 = vector.broadcast %42 : vector<1x64xf32> to vector<5x64xf32>
    %44 = arith.addf %41, %43 : vector<5x64xf32>
    %cst_19 = arith.constant 1.702000e+00 : f32
    %45 = vector.broadcast %cst_19 : f32 to vector<5x64xf32>
    %46 = arith.mulf %45, %44 : vector<5x64xf32>
    %47 = arith.negf %46 : vector<5x64xf32>
    %48 = math.exp %47 : vector<5x64xf32>
    %cst_20 = arith.constant 1.000000e+00 : f32
    %49 = vector.broadcast %cst_20 : f32 to vector<5x64xf32>
    %50 = arith.addf %49, %48 : vector<5x64xf32>
    %51 = arith.divf %49, %50 : vector<5x64xf32>
    %52 = arith.mulf %44, %51 : vector<5x64xf32>
    %53 = arith.mulf %52, %52 : vector<5x64xf32>
    %cst_21 = arith.constant dense<0.000000e+00> : vector<5xf32>
    %54 = vector.multi_reduction <add>, %53, %cst_21 [1] : vector<5x64xf32> to vector<5xf32>
    %55 = vector.shape_cast %54 : vector<5xf32> to vector<5x1xf32>
    %cst_22 = arith.constant 1.000000e+00 : f32
    %56 = vector.broadcast %cst_22 : f32 to vector<5x1xf32>
    %57 = arith.addf %56, %55 : vector<5x1xf32>
    %58 = math.sqrt %57 : vector<5x1xf32>
    %59 = arith.truncf %52 : vector<5x64xf32> to vector<5x64xbf16>
    %c0_23 = arith.constant 0 : index
    %c0_24 = arith.constant 0 : index
    %60 = vector.load %arg8[%c0_23, %c0_24] : memref<64x32xbf16, #tpu.memory_space<vmem>>, vector<64x32xbf16>
    %cst_25 = arith.constant dense<0.000000e+00> : vector<5x32xf32>
    %61 = tpu.matmul %59, %60, %cst_25 {dimension_numbers = #tpu.dot_dimension_numbers<[1], [0], [0], [1], [0, 0, 1, 1], [], []>} : vector<5x64xbf16>, vector<64x32xbf16>, vector<5x32xf32> -> vector<5x32xf32>
    %c0_26 = arith.constant 0 : index
    %c0_27 = arith.constant 0 : index
    %62 = vector.load %arg9[%c0_26, %c0_27] : memref<1x32xf32, #tpu.memory_space<vmem>>, vector<1x32xf32>
    %63 = vector.broadcast %58 : vector<5x1xf32> to vector<5x32xf32>
    %64 = vector.broadcast %62 : vector<1x32xf32> to vector<5x32xf32>
    %65 = arith.mulf %63, %64 : vector<5x32xf32>
    %66 = arith.addf %61, %65 : vector<5x32xf32>
    %c0_28 = arith.constant 0 : index
    %c0_29 = arith.constant 0 : index
    %67 = vector.load %arg10[%c0_28, %c0_29] : memref<1x32xf32, #tpu.memory_space<vmem>>, vector<1x32xf32>
    %68 = vector.broadcast %67 : vector<1x32xf32> to vector<5x32xf32>
    %69 = arith.addf %66, %68 : vector<5x32xf32>
    %70 = arith.addf %1, %69 : vector<5x32xf32>
    %c0_30 = arith.constant 0 : index
    %c0_31 = arith.constant 0 : index
    %c0_32 = arith.constant 0 : index
    %71 = vector.load %arg11[%c0_30, %c0_31, %c0_32] : memref<1x5x32xf32, #tpu.memory_space<vmem>>, vector<1x5x32xf32>
    %72 = vector.shape_cast %71 : vector<1x5x32xf32> to vector<5x32xf32>
    %73 = vector.shape_cast %70 : vector<5x32xf32> to vector<1x5x32xf32>
    tpu.vector_store %arg11[%c0_30, %c0_31, %c0_32], %73 {strides = array<i32>} : memref<1x5x32xf32, #tpu.memory_space<vmem>>, vector<1x5x32xf32>,
    return
  }
  func.func @transform_0(%arg0: i32, %arg1: i32) -> (i32, i32, i32) {
    %c0_i32 = arith.constant 0 : i32
    %c0_i32_0 = arith.constant 0 : i32
    return %arg0, %arg1, %c0_i32 : i32, i32, i32
  }
  func.func @transform_1(%arg0: i32, %arg1: i32) -> (i32, i32) {
    %c0_i32 = arith.constant 0 : i32
    %c0_i32_0 = arith.constant 0 : i32
    %c0_i32_1 = arith.constant 0 : i32
    return %c0_i32, %c0_i32_0 : i32, i32
  }
  func.func @transform_2(%arg0: i32, %arg1: i32) -> (i32, i32) {
    %c0_i32 = arith.constant 0 : i32
    %c0_i32_0 = arith.constant 0 : i32
    %c0_i32_1 = arith.constant 0 : i32
    return %c0_i32, %c0_i32_0 : i32, i32
  }
  func.func @transform_3(%arg0: i32, %arg1: i32) -> (i32, i32) {
    %c0_i32 = arith.constant 0 : i32
    %c0_i32_0 = arith.constant 0 : i32
    %c0_i32_1 = arith.constant 0 : i32
    return %c0_i32, %c0_i32_0 : i32, i32
  }
  func.func @transform_4(%arg0: i32, %arg1: i32) -> (i32, i32) {
    %c0_i32 = arith.constant 0 : i32
    %c0_i32_0 = arith.constant 0 : i32
    %c0_i32_1 = arith.constant 0 : i32
    return %c0_i32, %c0_i32_0 : i32, i32
  }
  func.func @transform_5(%arg0: i32, %arg1: i32) -> (i32, i32) {
    %c0_i32 = arith.constant 0 : i32
    %c0_i32_0 = arith.constant 0 : i32
    %c0_i32_1 = arith.constant 0 : i32
    return %c0_i32, %c0_i32_0 : i32, i32
  }
  func.func @transform_6(%arg0: i32, %arg1: i32) -> (i32, i32) {
    %c0_i32 = arith.constant 0 : i32
    %c0_i32_0 = arith.constant 0 : i32
    %c0_i32_1 = arith.constant 0 : i32
    return %c0_i32, %c0_i32_0 : i32, i32
  }
  func.func @transform_7(%arg0: i32, %arg1: i32) -> (i32, i32) {
    %c0_i32 = arith.constant 0 : i32
    %c0_i32_0 = arith.constant 0 : i32
    %c0_i32_1 = arith.constant 0 : i32
    return %c0_i32, %c0_i32_0 : i32, i32
  }
  func.func @transform_8(%arg0: i32, %arg1: i32) -> (i32, i32) {
    %c0_i32 = arith.constant 0 : i32
    %c0_i32_0 = arith.constant 0 : i32
    %c0_i32_1 = arith.constant 0 : i32
    return %c0_i32, %c0_i32_0 : i32, i32
  }
  func.func @transform_9(%arg0: i32, %arg1: i32) -> (i32, i32, i32) {
    %c0_i32 = arith.constant 0 : i32
    %c0_i32_0 = arith.constant 0 : i32
    return %arg0, %arg1, %c0_i32 : i32, i32, i32
  }
}

module attributes {stable_mosaic.version = 11 : i64} {
  func.func @_lift_kernel(%arg0: i32, %arg1: memref<10x32xf32, #tpu.memory_space<vmem>>, %arg2: memref<10x33xf32, #tpu.memory_space<vmem>>) attributes {dimension_semantics = [#tpu.dimension_semantics<parallel>], iteration_bounds = array<i64: 1>, scalar_prefetch = 0 : i64, scratch_operands = 0 : i64, tpu.core_type = #tpu.core_type<tc>, window_params = [{transform_indices = @transform_0, window_bounds = array<i64: 10, 32>}, {transform_indices = @transform_1, window_bounds = array<i64: 10, 33>}]} {
    %c0 = arith.constant 0 : index
    %c0_0 = arith.constant 0 : index
    %0 = vector.load %arg1[%c0, %c0_0] : memref<10x32xf32, #tpu.memory_space<vmem>>, vector<10x32xf32>
    %1 = arith.mulf %0, %0 : vector<10x32xf32>
    %cst = arith.constant dense<0.000000e+00> : vector<10xf32>
    %2 = vector.multi_reduction <add>, %1, %cst [1] : vector<10x32xf32> to vector<10xf32>
    %3 = vector.shape_cast %2 : vector<10xf32> to vector<10x1xf32>
    %cst_1 = arith.constant 1.000000e+00 : f32
    %4 = vector.broadcast %cst_1 : f32 to vector<10x1xf32>
    %5 = arith.addf %4, %3 : vector<10x1xf32>
    %6 = math.sqrt %5 : vector<10x1xf32>
    %7 = tpu.concatenate %6, %0 in 1 : vector<10x1xf32>, vector<10x32xf32> -> vector<10x33xf32>
    %c0_2 = arith.constant 0 : index
    %c0_3 = arith.constant 0 : index
    %8 = vector.load %arg2[%c0_2, %c0_3] : memref<10x33xf32, #tpu.memory_space<vmem>>, vector<10x33xf32>
    tpu.vector_store %arg2[%c0_2, %c0_3], %7 {strides = array<i32>} : memref<10x33xf32, #tpu.memory_space<vmem>>, vector<10x33xf32>,
    return
  }
  func.func @transform_0(%arg0: i32) -> (i32, i32) {
    %c0_i32 = arith.constant 0 : i32
    %c0_i32_0 = arith.constant 0 : i32
    return %arg0, %c0_i32 : i32, i32
  }
  func.func @transform_1(%arg0: i32) -> (i32, i32) {
    %c0_i32 = arith.constant 0 : i32
    %c0_i32_0 = arith.constant 0 : i32
    return %arg0, %c0_i32 : i32, i32
  }
}

module attributes {stable_mosaic.version = 11 : i64} {
  func.func @_post_ln_kernel(%arg0: memref<2x32xf32, #tpu.memory_space<vmem>>, %arg1: memref<1x32xf32, #tpu.memory_space<vmem>>, %arg2: memref<1x32xf32, #tpu.memory_space<vmem>>, %arg3: memref<2x33xf32, #tpu.memory_space<vmem>>) attributes {dimension_semantics = [], scalar_prefetch = 0 : i64, scratch_operands = 0 : i64, tpu.core_type = #tpu.core_type<tc>} {
    %c0 = arith.constant 0 : index
    %c0_0 = arith.constant 0 : index
    %0 = vector.load %arg0[%c0, %c0_0] : memref<2x32xf32, #tpu.memory_space<vmem>>, vector<2x32xf32>
    %c0_1 = arith.constant 0 : index
    %c0_2 = arith.constant 0 : index
    %1 = vector.load %arg1[%c0_1, %c0_2] : memref<1x32xf32, #tpu.memory_space<vmem>>, vector<1x32xf32>
    %c0_3 = arith.constant 0 : index
    %c0_4 = arith.constant 0 : index
    %2 = vector.load %arg2[%c0_3, %c0_4] : memref<1x32xf32, #tpu.memory_space<vmem>>, vector<1x32xf32>
    %cst = arith.constant dense<0.000000e+00> : vector<2xf32>
    %3 = vector.multi_reduction <add>, %0, %cst [1] : vector<2x32xf32> to vector<2xf32>
    %4 = vector.shape_cast %3 : vector<2xf32> to vector<2x1xf32>
    %cst_5 = arith.constant 3.200000e+01 : f32
    %5 = vector.broadcast %cst_5 : f32 to vector<2x1xf32>
    %6 = arith.divf %4, %5 : vector<2x1xf32>
    %7 = vector.broadcast %6 : vector<2x1xf32> to vector<2x32xf32>
    %8 = arith.subf %0, %7 : vector<2x32xf32>
    %9 = vector.broadcast %6 : vector<2x1xf32> to vector<2x32xf32>
    %10 = arith.subf %0, %9 : vector<2x32xf32>
    %11 = arith.mulf %8, %10 : vector<2x32xf32>
    %cst_6 = arith.constant dense<0.000000e+00> : vector<2xf32>
    %12 = vector.multi_reduction <add>, %11, %cst_6 [1] : vector<2x32xf32> to vector<2xf32>
    %13 = vector.shape_cast %12 : vector<2xf32> to vector<2x1xf32>
    %cst_7 = arith.constant 3.200000e+01 : f32
    %14 = vector.broadcast %cst_7 : f32 to vector<2x1xf32>
    %15 = arith.divf %13, %14 : vector<2x1xf32>
    %16 = vector.broadcast %6 : vector<2x1xf32> to vector<2x32xf32>
    %17 = arith.subf %0, %16 : vector<2x32xf32>
    %cst_8 = arith.constant 9.99999974E-6 : f32
    %18 = vector.broadcast %cst_8 : f32 to vector<2x1xf32>
    %19 = arith.addf %15, %18 : vector<2x1xf32>
    %20 = math.rsqrt %19 : vector<2x1xf32>
    %21 = vector.broadcast %20 : vector<2x1xf32> to vector<2x32xf32>
    %22 = arith.mulf %17, %21 : vector<2x32xf32>
    %23 = vector.broadcast %1 : vector<1x32xf32> to vector<2x32xf32>
    %24 = arith.mulf %22, %23 : vector<2x32xf32>
    %25 = vector.broadcast %2 : vector<1x32xf32> to vector<2x32xf32>
    %26 = arith.addf %24, %25 : vector<2x32xf32>
    %27 = arith.mulf %26, %26 : vector<2x32xf32>
    %cst_9 = arith.constant dense<0.000000e+00> : vector<2xf32>
    %28 = vector.multi_reduction <add>, %27, %cst_9 [1] : vector<2x32xf32> to vector<2xf32>
    %29 = vector.shape_cast %28 : vector<2xf32> to vector<2x1xf32>
    %cst_10 = arith.constant 1.000000e+00 : f32
    %30 = vector.broadcast %cst_10 : f32 to vector<2x1xf32>
    %31 = arith.addf %30, %29 : vector<2x1xf32>
    %32 = math.sqrt %31 : vector<2x1xf32>
    %33 = tpu.concatenate %32, %26 in 1 : vector<2x1xf32>, vector<2x32xf32> -> vector<2x33xf32>
    %c0_11 = arith.constant 0 : index
    %c0_12 = arith.constant 0 : index
    %34 = vector.load %arg3[%c0_11, %c0_12] : memref<2x33xf32, #tpu.memory_space<vmem>>, vector<2x33xf32>
    tpu.vector_store %arg3[%c0_11, %c0_12], %33 {strides = array<i32>} : memref<2x33xf32, #tpu.memory_space<vmem>>, vector<2x33xf32>,
    return
  }
}

</mosaic_0001>

<bundles_post_ra>
// kernel: hyp_clip_vision_forward.12
= control target key start
LH: loop header
LB: loop body
LE: loop exit
PB: predicated region body
PF: predicated region fallthrough
CT: control target
= control target key end

     0   :  { %6 = vsyncpa [#allocation3], 0  ;;  %s187_s0 = inlined_call_operand.hbm [shape: f32[10,32], index: 0, kind: input, shape index: {}]   ;;  %s188_s1 = inlined_call_operand.hbm [shape: f32[10,33], index: 1, kind: output, shape index: {}]  }
   0x1   :  { %7 = vsyncpa [#allocation4], 0  ;;  %s140_s6 = smov [#allocation2]   ;;  %s92_s10 = scalar_lea.hbm %s187_s0, 256 }
   0x2   :  { %s13_s7 = sshll.u32 %s140_s6, 4  ;;  %p93_p0 = scmp.ne.s32.totalorder %s187_s0, %s92_s10  ;;  %s14_s7 = int_to_ptr.vmem [resolvable:$true] %s13_s7 }
   0x3   :  { %p96_p1 = scmp.lt.u32.totalorder %s92_s10, %s187_s0 }
   0x5   :  { %p98_p2 = pnand %p96_p1, %p93_p0 }
   0x7   :  { %101 = shalt.err (!%p98_p2)
}
   0x8   :  { %s102_s15 = scalar_lea.vmem %s14_s7, 256  ;;  %p107_p4 = scmp.lt.s32.totalorder %s14_s7, %s14_s7 }
   0x9   :  { %p103_p3 = scmp.ne.s32.totalorder %s14_s7, %s102_s15  ;;  %p108_p5 = scmp.lt.s32.totalorder %s102_s15, %s102_s15 }
   0xb   :  { %p109_p6 = por %p108_p5, %p107_p4 }
   0xd   :  { %p110_p7 = pnand %p109_p6, %p103_p3 }
   0xf   :  { %113 = shalt.err (!%p110_p7)
}
  0x10   :  { %s141_s16 = smov 128   ;;  %s142_s17 = smov 8  }
  0x11   :  { %19 = dma.hbm_to_vmem [thread:$0]  %s187_s0, 256, %s14_s7, [#allocation3], %s141_s16, %s141_s16, %s142_s17  }
  0x12   :  { %136 = dma.done.wait [#allocation3], 256  }
  0x13   :  { %137 = vsyncadd [#allocation3], 4294967040  ;;  %v23_v0 = vld [vmem:[#allocation2] sm:$0xff]  ;;  %vm27_vm0 = vcmask 261120   ;;  %v24_v1 = vld [vmem:[#allocation2 + $0x8] sm:$0x3] }
  0x14   :  { %v25_v2 = vmul.f32 %v23_v0, %v23_v0  ;;  %v26_v3 = vmul.f32 %v24_v1, %v24_v1  ;;  %s143_s20 = smov 1   ;;  %vm31_vm1 = vcmask 254976   ;;  %vm59_vm2 = vcmask 7168   ;;  %s144_s0 = smov [#allocation5]  }
  0x15   :  { %53 = vrot.lane.b32.xlu1 %v23_v0, %s143_s20  ;;  %vm62_vm5 = vcmask 269312   ;;  %s71_s21 = sshll.u32 %s144_s0, 4  ;;  %vm64_vm8 = vcmask 263168   ;;  %s72_s21 = int_to_ptr.vmem [resolvable:$true] %s71_s21 }
  0x16   :  { %v28_v4 = vsel %vm27_vm0, %v25_v2, 0.0  ;;  %v32_v5 = vsel %vm31_vm1, %v26_v3, 0.0  ;;  %s114_s22 = scalar_lea.vmem %s72_s21, 256  ;;  %p119_p9 = scmp.lt.s32.totalorder %s72_s21, %s72_s21 }
  0x17   :  { %29 = vadd.xlane.f32.xlu0 %v28_v4  ;;  %p115_p8 = scmp.ne.s32.totalorder %s72_s21, %s114_s22  ;;  %p120_p10 = scmp.lt.s32.totalorder %s114_s22, %s114_s22 }
  0x19   :  { %55 = vrot.lane.b32.xlu1 %v24_v1, %s143_s20  ;;  %p121_p11 = por %p120_p10, %p119_p9 }
  0x1b   :  { %33 = vadd.xlane.f32.xlu0 %v32_v5  ;;  %p122_p12 = pnand %p121_p11, %p115_p8 }
  0x87   :  { %v54_v11 = vpop.permute.xlu1 %53 }
  0x8b   :  { %v56_v19 = vpop.permute.xlu1 %55 }
  0xa4   :  { %v30_v6 = vpop.xlane.xlu0 %29 }
  0xa5   :  { %v35_v7 = vadd.f32 1.0, %v30_v6 }
  0xa7   :  { %88 = vrsqrt.f32 %v35_v7  ;;  %vm39_vm3 = vcmp.eq.f32.partialorder %v35_v7, inf  ;;  %v42_v13 = vand.u32 2147483648, %v35_v7  ;;  %vm41_vm4 = vcmp.eq.f32.partialorder %v35_v7, 0.0 }
  0xa8   :  { %v34_v8 = vpop.xlane.xlu0 %33 }
  0xa9   :  { %v36_v9 = vadd.f32 1.0, %v34_v8 }
  0xab   :  { %90 = vrsqrt.f32 %v36_v9  ;;  %vm46_vm6 = vcmp.eq.f32.partialorder %v36_v9, inf  ;;  %v49_v20 = vand.u32 2147483648, %v36_v9  ;;  %vm48_vm7 = vcmp.eq.f32.partialorder %v36_v9, 0.0 }
  0xb1   :  { %v89_v10 = vpop.eup %88 }
  0xb2   :  { %v38_v12 = vmul.f32 %v89_v10, %v35_v7 }
  0xb4   :  { %v40_v14 = vsel %vm39_vm3, %v35_v7, %v38_v12 }
  0xb5   :  { %v91_v15 = vpop.eup %90  ;;  %v43_v16 = vsel %vm41_vm4, %v42_v13, %v40_v14 }
  0xb6   :  { %v60_v17 = vsel %vm59_vm2, %v43_v16, %v54_v11  ;;  %v45_v18 = vmul.f32 %v91_v15, %v36_v9 }
  0xb7   :  { %63 = vst.msk [vmem:[#allocation5] sm:$0xff] %vm62_vm5, %v60_v17 }
  0xb8   :  { %v47_v21 = vsel %vm46_vm6, %v36_v9, %v45_v18 }
  0xb9   :  { %v50_v22 = vsel %vm48_vm7, %v49_v20, %v47_v21 }
  0xba   :  { %v61_v23 = vsel %vm59_vm2, %v50_v22, %v56_v19 }
  0xbb   :  { %65 = vst.msk [vmem:[#allocation5 + $0x8] sm:$0x3] %vm64_vm8, %v61_v23 }
  0xbc   :  { %125 = shalt.err (!%p122_p12)
}
  0xbd   :  { %s126_s25 = scalar_lea.hbm %s188_s1, 256 }
  0xbe   :  { %p127_p13 = scmp.ne.s32.totalorder %s188_s1, %s126_s25  ;;  %p130_p0 = scmp.lt.u32.totalorder %s126_s25, %s188_s1 }
  0xc0   :  { %p132_p1 = pnand %p130_p0, %p127_p13 }
  0xc2   :  { %135 = shalt.err (!%p132_p1)
}
  0xc3   :  { %77 = dma.vmem_to_hbm [thread:$0]  %s72_s21, 256, %s188_s1, [#allocation4], %s141_s16, %s141_s16, %s142_s17  }
  0xc4   :  { %138 = dma.done.wait [#allocation4], 256  }
  0xc5   :  { %139 = vsyncadd [#allocation4], 4294967040 }
  0xc6   :  { %81 = vsyncpa [#allocation3], 1 }
  0xc7   :  { %82 = vsyncpa [#allocation4], 1 }

// kernel: hyp_clip_vision_forward.7
= control target key start
LH: loop header
LB: loop body
LE: loop exit
PB: predicated region body
PF: predicated region fallthrough
CT: control target
= control target key end

     0   :  { %7 = vsyncpa [#allocation3], 0  ;;  %s375_s0 = inlined_call_operand.hbm [shape: bf16[8,192], index: 0, kind: input, shape index: {}]   ;;  %s376_s1 = inlined_call_operand.hbm [shape: bf16[192,32], index: 1, kind: input, shape index: {}]   ;;  %s377_s2 = inlined_call_operand.hbm [shape: f32[8,32], index: 2, kind: output, shape index: {}]  }
   0x1   :  { %8 = vsyncpa [#allocation6], 0 }
   0x2   :  { %9 = vsyncpa [#allocation4], 0  ;;  %s311_s9 = smov [#allocation2]   ;;  %s312_s11 = smov [#allocation5]  }
   0x3   :  { %s16_s10 = sshll.u32 %s311_s9, 4  ;;  %s25_s12 = sshll.u32 %s312_s11, 4  ;;  %s17_s10 = int_to_ptr.vmem [resolvable:$true] %s16_s10  ;;  %s332_s12 = int_to_ptr.vmem [resolvable:$true] %s25_s12 }
   0x4   :  { %s239_s15 = scalar_lea.hbm %s375_s0, 128 }
   0x5   :  { %p240_p0 = scmp.ne.s32.totalorder %s375_s0, %s239_s15  ;;  %p243_p1 = scmp.lt.u32.totalorder %s239_s15, %s375_s0 }
   0x7   :  { %p245_p2 = pnand %p243_p1, %p240_p0 }
   0x9   :  { %248 = shalt.err (!%p245_p2)
}
   0xa   :  { %s249_s20 = scalar_lea.vmem %s17_s10, 128  ;;  %p254_p4 = scmp.lt.s32.totalorder %s17_s10, %s17_s10 }
   0xb   :  { %p250_p3 = scmp.ne.s32.totalorder %s17_s10, %s249_s20  ;;  %p255_p5 = scmp.lt.s32.totalorder %s249_s20, %s249_s20 }
   0xd   :  { %p256_p6 = por %p255_p5, %p254_p4 }
   0xf   :  { %p257_p7 = pnand %p256_p6, %p250_p3 }
  0x11   :  { %260 = shalt.err (!%p257_p7)
}
  0x12   :  { %19 = dma.hbm_to_vmem [thread:$0]  %s375_s0, 128, %s17_s10, [#allocation3]  }
  0x13   :  { %s261_s25 = scalar_lea.hbm %s376_s1, 1536 }
  0x14   :  { %p262_p8 = scmp.ne.s32.totalorder %s376_s1, %s261_s25  ;;  %p265_p9 = scmp.lt.u32.totalorder %s261_s25, %s376_s1 }
  0x16   :  { %p267_p10 = pnand %p265_p9, %p262_p8 }
  0x18   :  { %270 = shalt.err (!%p267_p10)
}
  0x19   :  { %s271_s30 = scalar_lea.vmem %s332_s12, 1536  ;;  %p276_p12 = scmp.lt.s32.totalorder %s332_s12, %s332_s12 }
  0x1a   :  { %p272_p11 = scmp.ne.s32.totalorder %s332_s12, %s271_s30  ;;  %p277_p13 = scmp.lt.s32.totalorder %s271_s30, %s271_s30 }
  0x1c   :  { %p278_p0 = por %p277_p13, %p276_p12 }
  0x1e   :  { %p279_p1 = pnand %p278_p0, %p272_p11 }
  0x20   :  { %282 = shalt.err (!%p279_p1)
}
  0x21   :  { %s313_s0 = smov 64   ;;  %s314_s3 = smov 4  }
  0x22   :  { %31 = dma.hbm_to_vmem [thread:$0]  %s376_s1, 1536, %s332_s12, [#allocation6], %s313_s0, %s313_s0, %s314_s3  }
  0x23   :  { %305 = dma.done.wait [#allocation3], 128  }
  0x24   :  { %306 = vsyncadd [#allocation3], 4294967168 }
  0x25   :  { %307 = dma.done.wait [#allocation6], 1536  }
  0x26   :  { %308 = vsyncadd [#allocation6], 4294965760  ;;  %v315_v0 = vmov 0   ;;  %v225_v1 = vld [vmem:[#allocation5] sm:$0xff]   ;;  %v226_v2 = vld [vmem:[#allocation5 + $0x8] sm:$0xff]   ;;  %vm142_vm0 = vcmask 523264  }
  0x27   :  { %146 = vmatprep.subr.bf16.mxu0 %v315_v0  ;;  %v227_v3 = vld [vmem:[#allocation5 + $0x10] sm:$0xff]   ;;  %v228_v4 = vld [vmem:[#allocation5 + $0x18] sm:$0xff]   ;;  %v229_v7 = vld [vmem:[#allocation5 + $0x20] sm:$0xff]   ;;  %s316_s1 = smov [#allocation7]   ;;  %vm186_vm1 = vcmask 261120  }
  0x28   :  { %147 = vmatpush1.bf16.msra.mxu0 %v225_v1  ;;  %v39_v5 = vld [vmem:[#allocation2] sm:$0xff]  ;;  %v230_v8 = vld [vmem:[#allocation5 + $0x28] sm:$0xff]   ;;  %v231_v9 = vld [vmem:[#allocation5 + $0x30] sm:$0xff]   ;;  %s194_s6 = sshll.u32 %s316_s1, 4  ;;  %s195_s6 = int_to_ptr.vmem [resolvable:$true] %s194_s6 }
  0x29   :  { %148 = vmatprep.subr.bf16.mxu0 %v315_v0  ;;  %v205_v6 = vcombine.high %v39_v5, %v39_v5  ;;  %v232_v10 = vld [vmem:[#allocation5 + $0x38] sm:$0xff]   ;;  %v233_v11 = vld [vmem:[#allocation5 + $0x40] sm:$0xff]   ;;  %v234_v12 = vld [vmem:[#allocation5 + $0x48] sm:$0xff]   ;;  %v204_v15 = vcombine.low %v39_v5, %v39_v5  ;;  %s283_s7 = scalar_lea.vmem %s195_s6, 128  ;;  %p288_p3 = scmp.lt.s32.totalorder %s195_s6, %s195_s6 }
  0x2a   :  { %v235_v13 = vld [vmem:[#allocation5 + $0x50] sm:$0xff]   ;;  %v236_v14 = vld [vmem:[#allocation5 + $0x58] sm:$0xff]   ;;  %p284_p2 = scmp.ne.s32.totalorder %s195_s6, %s283_s7  ;;  %p289_p4 = scmp.lt.s32.totalorder %s283_s7, %s283_s7 }
  0x2b   :  { %218 = vmatprep.mubr.msk.bf16.mxu0 %vm142_vm0, %v205_v6 }
  0x2c   :  { %149 = vmatpush1.bf16.msra.mxu0 %v226_v2  ;;  %p290_p5 = por %p289_p4, %p288_p3 }
  0x2d   :  { %150 = vmatprep.subr.bf16.mxu0 %v315_v0 }
  0x2e   :  { %p291_p6 = pnand %p290_p5, %p284_p2 }
  0x30   :  { %151 = vmatpush1.bf16.msra.mxu0 %v227_v3 }
  0x31   :  { %152 = vmatprep.subr.bf16.mxu0 %v315_v0 }
  0x34   :  { %153 = vmatpush1.bf16.msra.mxu0 %v228_v4 }
  0x35   :  { %154 = vmatprep.subr.bf16.mxu0 %v315_v0 }
  0x38   :  { %155 = vmatpush1.bf16.msra.mxu0 %v229_v7 }
  0x39   :  { %156 = vmatprep.subr.bf16.mxu0 %v315_v0 }
  0x3c   :  { %157 = vmatpush1.bf16.msra.mxu0 %v230_v8 }
  0x3d   :  { %158 = vmatprep.subr.bf16.mxu0 %v315_v0 }
  0x40   :  { %159 = vmatpush1.bf16.msra.mxu0 %v231_v9 }
  0x41   :  { %160 = vmatprep.subr.bf16.mxu0 %v315_v0 }
  0x44   :  { %161 = vmatpush1.bf16.msra.mxu0 %v232_v10 }
  0x45   :  { %162 = vmatprep.subr.bf16.mxu0 %v315_v0 }
  0x48   :  { %163 = vmatpush1.bf16.msra.mxu0 %v233_v11 }
  0x49   :  { %164 = vmatprep.subr.bf16.mxu0 %v315_v0 }
  0x4c   :  { %165 = vmatpush1.bf16.msra.mxu0 %v234_v12 }
  0x4d   :  { %166 = vmatprep.subr.bf16.mxu0 %v315_v0 }
  0x50   :  { %167 = vmatpush1.bf16.msra.mxu0 %v235_v13 }
  0x51   :  { %168 = vmatprep.subr.bf16.mxu0 %v315_v0 }
  0x54   :  { %169 = vmatpush1.bf16.msra.mxu0 %v236_v14 }
  0x57   :  { %179 = vmatmul.mubr.bf16.vlgmr.msra.gmra.mrb[0].mxu0 %v204_v15 }
 0x12a   :  { %v180_v16 = vpop.f32.mrb[0].mxu0 }
 0x12b   :  { %v182_v17 = vpop.f32.mrb[1].mxu0  ;;  %187 = vst.msk [vmem:[#allocation7] sm:$0xff] %vm186_vm1, %v180_v16 }
 0x12c   :  { %v183_v18 = vpop.f32.mrb[2].mxu0 }
 0x12d   :  { %294 = shalt.err (!%p291_p6)
}
 0x12e   :  { %s295_s10 = scalar_lea.hbm %s377_s2, 128 }
 0x12f   :  { %p296_p7 = scmp.ne.s32.totalorder %s377_s2, %s295_s10  ;;  %p299_p8 = scmp.lt.u32.totalorder %s295_s10, %s377_s2 }
 0x131   :  { %p301_p9 = pnand %p299_p8, %p296_p7 }
 0x133   :  { %304 = shalt.err (!%p301_p9)
}
 0x134   :  { %197 = dma.vmem_to_hbm [thread:$0]  %s195_s6, 128, %s377_s2, [#allocation4]   ;;  %v184_v19 = vpop.f32.mrb[3].mxu0 }
 0x135   :  { %309 = dma.done.wait [#allocation4], 128  }
 0x136   :  { %310 = vsyncadd [#allocation4], 4294967168 }
 0x137   :  { %201 = vsyncpa [#allocation3], 1 }
 0x138   :  { %202 = vsyncpa [#allocation6], 1 }
 0x139   :  { %203 = vsyncpa [#allocation4], 1 }

// kernel: hyp_clip_vision_forward.9
= control target key start
LH: loop header
LB: loop body
LE: loop exit
PB: predicated region body
PF: predicated region fallthrough
CT: control target
= control target key end

     0   :  { %s1918_s0 = inlined_call_operand.hbm [shape: f32[2,5,32], index: 0, kind: input, shape index: {}]   ;;  %s1919_s1 = inlined_call_operand.hbm [shape: f32[1,32], index: 1, kind: input, shape index: {}]   ;;  %s1920_s2 = inlined_call_operand.hbm [shape: f32[1,32], index: 2, kind: input, shape index: {}]   ;;  %s1921_s3 = inlined_call_operand.hbm [shape: bf16[32,64], index: 3, kind: input, shape index: {}]   ;;  %s1922_s4 = inlined_call_operand.hbm [shape: f32[1,64], index: 4, kind: input, shape index: {}]   ;;  %s1923_s5 = inlined_call_operand.hbm [shape: f32[1,64], index: 5, kind: input, shape index: {}]   ;;  %s1924_s6 = inlined_call_operand.hbm [shape: bf16[64,32], index: 6, kind: input, shape index: {}]   ;;  %s1925_s7 = inlined_call_operand.hbm [shape: f32[1,32], index: 7, kind: input, shape index: {}]   ;;  %s1926_s8 = inlined_call_operand.hbm [shape: f32[1,32], index: 8, kind: input, shape index: {}]   ;;  %s1927_s9 = inlined_call_operand.hbm [shape: f32[2,5,32], index: 9, kind: output, shape index: {}]  }
   0x1   :  { %1936 = sst [smem:[#allocation24_spill]] %s1919_s1 }
   0x2   :  { %1937 = sst [smem:[#allocation25_spill]] %s1920_s2 }
   0x3   :  { %1938 = sst [smem:[#allocation26_spill]] %s1921_s3 }
   0x4   :  { %1939 = sst [smem:[#allocation27_spill]] %s1927_s9 }
   0x5   :  { %14 = vsyncpa [#allocation3], 0 }
   0x6   :  { %16 = vsyncpa [#allocation3 + $0x1], 0 }
   0x7   :  { %17 = vsyncpa [#allocation6], 0 }
   0x8   :  { %18 = vsyncpa [#allocation9], 0 }
   0x9   :  { %19 = vsyncpa [#allocation12], 0 }
   0xa   :  { %20 = vsyncpa [#allocation15], 0 }
   0xb   :  { %21 = vsyncpa [#allocation4], 0 }
   0xc   :  { %23 = vsyncpa [#allocation4 + $0x1], 0  ;;  %s1531_s30 = smov 0   ;;  %s1533_s10 = smov 0  }
   0xd   :  { %s1535_s11 = smov 0   ;;  %s1537_s12 = smov 0  }
   0xe   :  { %s1539_s13 = smov 0   ;;  %s1541_s14 = smov 0  }
   0xf LB: > { %s1931_s15 = sadd.s32 4294967295, %s1465_s14   ;;  %p880_p0 = scmp.ge.s32.totalorder %s1465_s14, 1  ;;  %s1465_s14 = sphi %s1541_s14, %s29_s14   ;;  %s1461_s13 = sphi %s1539_s13, %s1966_s13   ;;  %s1457_s12 = sphi %s1537_s12, %s1965_s12   ;;  %s1453_s11 = sphi %s1535_s11, %s1964_s11   ;;  %s1449_s10 = sphi %s1533_s10, %s1963_s10   ;;  %s1445_s30 = sphi %s1531_s30, %s1962_s30  }
  0x10   : > { %p1565_p1 = scmp.eq.s32.totalorder %s1931_s15, 0  ;;  %p270_p2 = scmp.lt.s32.totalorder %s1465_s14, 3 }
  0x11   : > { %s1467_s18 = smov [#allocation5]   ;;  %s1468_s20 = smov [#allocation8]  }
  0x12   : > { %s1940_s16 = scalar_select %p1565_p1, 1, 0 }
  0x13   : > { %p1570_p3 = pnand %p880_p0, %p270_p2  ;;  %s283_s19 = sshll.u32 %s1467_s18, 4  ;;  %s284_s19 = int_to_ptr.vmem [resolvable:$true] %s283_s19 }
  0x14   : > { %s304_s21 = sshll.u32 %s1468_s20, 4  ;;  %s1469_s23 = smov [#allocation11]   ;;  %s1583_s21 = int_to_ptr.vmem [resolvable:$true] %s304_s21 }
  0x15   : > { %s1941_s17 = scalar_select %p1570_p3, 1, 0 }
  0x16   : > { %p986_p5 = pneg %p1570_p3  ;;  %s1585_s24 = sshll.u32 %s1469_s23, 4  ;;  %s330_s24 = int_to_ptr.vmem [resolvable:$true] %s1585_s24 }
  0x17   : > { %s1943_s1 = sld [smem:[#allocation24_spill]] }
  0x18   : > { %p1579_p6 = pnand %p986_p5, %p1565_p1 }
  0x1a   : > { %p1595_p8 = pneg %p1579_p6 }
  0x1d   : > { %s1113_s27 = scalar_lea.hbm %s1943_s1, 16 }
  0x1e   : > { %p1114_p7 = scmp.ne.s32.totalorder %s1943_s1, %s1113_s27  ;;  %p1120_p11 = scmp.lt.u32.totalorder %s1113_s27, %s1943_s1 }
  0x20   : > { %p1116_p9 = pnand %p1595_p8, %p1114_p7 }
  0x22   : > { %p1117_p10 = pneg %p1116_p9 }
  0x24   : > { %p1122_p12 = pnand %p1120_p11, %p1117_p10 }
  0x26   : > { %1125 = shalt.err (!%p1122_p12)
}
  0x27   : > { %s1126_s25 = scalar_lea.vmem %s284_s19, 16  ;;  %s1133_s26 = scalar_lea.vmem %s284_s19, 32 }
  0x28   : > { %p1127_p13 = scmp.ne.s32.totalorder %s284_s19, %s1126_s25  ;;  %p1134_p5 = scmp.lt.s32.totalorder %s284_s19, %s284_s19 }
  0x29   : > { %p1135_p4 = scmp.lt.s32.totalorder %s1133_s26, %s1126_s25 }
  0x2a   : > { %p1129_p0 = pnand %p1127_p13, %p1595_p8 }
  0x2b   : > { %p1136_p3 = por %p1135_p4, %p1134_p5 }
  0x2c   : > { %p1130_p2 = pneg %p1129_p0 }
  0x2e   : > { %p1137_p1 = pnand %p1136_p3, %p1130_p2 }
  0x30   : > { %1140 = shalt.err (!%p1137_p1)
}
  0x31   : > { %989 = dma.hbm_to_vmem [thread:$0]  (!%p1579_p6), %s1943_s1, 16, %s284_s19, [#allocation6]  }
  0x32   : > { %s1945_s3 = sld [smem:[#allocation26_spill]] }
  0x38   : > { %s1141_s23 = scalar_lea.hbm %s1945_s3, 256 }
  0x39   : > { %p1142_p7 = scmp.ne.s32.totalorder %s1945_s3, %s1141_s23  ;;  %p1148_p1 = scmp.lt.u32.totalorder %s1141_s23, %s1945_s3 }
  0x3b   : > { %p1144_p9 = pnand %p1142_p7, %p1595_p8 }
  0x3d   : > { %p1145_p4 = pneg %p1144_p9 }
  0x3f   : > { %p1150_p3 = pnand %p1148_p1, %p1145_p4 }
  0x41   : > { %1153 = shalt.err (!%p1150_p3)
}
  0x42   : > { %s1154_s19 = scalar_lea.vmem %s1583_s21, 256  ;;  %p1162_p13 = scmp.lt.s32.totalorder %s1583_s21, %s1583_s21 }
  0x43   : > { %p1155_p10 = scmp.ne.s32.totalorder %s1583_s21, %s1154_s19  ;;  %p1163_p0 = scmp.lt.s32.totalorder %s1154_s19, %s1154_s19 }
  0x45   : > { %p1157_p11 = pnand %p1155_p10, %p1595_p8  ;;  %p1164_p2 = por %p1163_p0, %p1162_p13 }
  0x47   : > { %p1158_p12 = pneg %p1157_p11 }
  0x49   : > { %p1165_p5 = pnand %p1164_p2, %p1158_p12 }
  0x4b   : > { %1168 = shalt.err (!%p1165_p5)
}
  0x4c   : > { %s1933_s9 = smov 64   ;;  %s1934_s15 = smov 4  }
  0x4d   : > { %995 = dma.hbm_to_vmem [thread:$0]  (!%p1579_p6), %s1945_s3, 256, %s1583_s21, [#allocation9], %s1933_s9, %s1933_s9, %s1934_s15  }
  0x4e   : > { %s1169_s23 = scalar_lea.hbm %s1923_s5, 16 }
  0x4f   : > { %p1170_p7 = scmp.ne.s32.totalorder %s1923_s5, %s1169_s23  ;;  %p1176_p1 = scmp.lt.u32.totalorder %s1169_s23, %s1923_s5 }
  0x51   : > { %p1172_p9 = pnand %p1170_p7, %p1595_p8 }
  0x53   : > { %p1173_p4 = pneg %p1172_p9 }
  0x55   : > { %p1178_p3 = pnand %p1176_p1, %p1173_p4 }
  0x57   : > { %1181 = shalt.err (!%p1178_p3)
}
  0x58   : > { %s1182_s28 = scalar_lea.vmem %s330_s24, 16  ;;  %s1189_s21 = scalar_lea.vmem %s330_s24, 32 }
  0x59   : > { %p1183_p10 = scmp.ne.s32.totalorder %s330_s24, %s1182_s28  ;;  %p1190_p13 = scmp.lt.s32.totalorder %s330_s24, %s330_s24 }
  0x5a   : > { %p1191_p0 = scmp.lt.s32.totalorder %s1189_s21, %s1182_s28 }
  0x5b   : > { %p1185_p11 = pnand %p1183_p10, %p1595_p8 }
  0x5c   : > { %p1192_p2 = por %p1191_p0, %p1190_p13 }
  0x5d   : > { %p1186_p12 = pneg %p1185_p11 }
  0x5f   : > { %p1193_p5 = pnand %p1192_p2, %p1186_p12 }
  0x61   : > { %1196 = shalt.err (!%p1193_p5)
}
  0x62   : > { %1001 = dma.hbm_to_vmem [thread:$0]  (!%p1579_p6), %s1923_s5, 16, %s330_s24, [#allocation12]  }
  0x63   : > { %s1472_s1 = smov [#allocation14]   ;;  %s1473_s23 = smov [#allocation7]  }
  0x64   : > { %s353_s20 = sshll.u32 %s1472_s1, 4  ;;  %s294_s25 = sshll.u32 %s1473_s23, 4  ;;  %s354_s20 = int_to_ptr.vmem [resolvable:$true] %s353_s20  ;;  %s295_s25 = int_to_ptr.vmem [resolvable:$true] %s294_s25 }
  0x65   : > { %s1197_s9 = scalar_lea.hbm %s1925_s7, 16 }
  0x66   : > { %p1198_p7 = scmp.ne.s32.totalorder %s1925_s7, %s1197_s9  ;;  %p1204_p1 = scmp.lt.u32.totalorder %s1197_s9, %s1925_s7 }
  0x68   : > { %p1200_p9 = pnand %p1198_p7, %p1595_p8 }
  0x6a   : > { %p1201_p4 = pneg %p1200_p9 }
  0x6c   : > { %p1206_p3 = pnand %p1204_p1, %p1201_p4 }
  0x6e   : > { %1209 = shalt.err (!%p1206_p3)
}
  0x6f   : > { %s1210_s24 = scalar_lea.vmem %s354_s20, 16  ;;  %s1217_s27 = scalar_lea.vmem %s354_s20, 32 }
  0x70   : > { %p1211_p10 = scmp.ne.s32.totalorder %s354_s20, %s1210_s24  ;;  %p1218_p13 = scmp.lt.s32.totalorder %s354_s20, %s354_s20 }
  0x71   : > { %p1219_p0 = scmp.lt.s32.totalorder %s1217_s27, %s1210_s24 }
  0x72   : > { %p1213_p11 = pnand %p1211_p10, %p1595_p8 }
  0x73   : > { %p1220_p2 = por %p1219_p0, %p1218_p13 }
  0x74   : > { %p1214_p12 = pneg %p1213_p11 }
  0x76   : > { %p1221_p5 = pnand %p1220_p2, %p1214_p12 }
  0x78   : > { %1224 = shalt.err (!%p1221_p5)
}
  0x79   : > { %1007 = dma.hbm_to_vmem [thread:$0]  (!%p1579_p6), %s1925_s7, 16, %s354_s20, [#allocation15]  }
  0x7a   : > { %s1946_s2 = sld [smem:[#allocation25_spill]] }
  0x80   : > { %s1225_s26 = scalar_lea.hbm %s1946_s2, 16 }
  0x81   : > { %p1226_p7 = scmp.ne.s32.totalorder %s1946_s2, %s1225_s26  ;;  %p1232_p1 = scmp.lt.u32.totalorder %s1225_s26, %s1946_s2 }
  0x83   : > { %p1228_p9 = pnand %p1226_p7, %p1595_p8 }
  0x85   : > { %p1229_p4 = pneg %p1228_p9 }
  0x87   : > { %p1234_p3 = pnand %p1232_p1, %p1229_p4 }
  0x89   : > { %1237 = shalt.err (!%p1234_p3)
}
  0x8a   : > { %s1238_s24 = scalar_lea.vmem %s295_s25, 16  ;;  %s1245_s20 = scalar_lea.vmem %s295_s25, 32 }
  0x8b   : > { %p1239_p10 = scmp.ne.s32.totalorder %s295_s25, %s1238_s24  ;;  %p1246_p13 = scmp.lt.s32.totalorder %s295_s25, %s295_s25 }
  0x8c   : > { %p1247_p0 = scmp.lt.s32.totalorder %s1245_s20, %s1238_s24 }
  0x8d   : > { %p1241_p11 = pnand %p1239_p10, %p1595_p8 }
  0x8e   : > { %p1248_p2 = por %p1247_p0, %p1246_p13 }
  0x8f   : > { %p1242_p12 = pneg %p1241_p11 }
  0x91   : > { %p1249_p5 = pnand %p1248_p2, %p1242_p12 }
  0x93   : > { %1252 = shalt.err (!%p1249_p5)
}
  0x94   : > { %992 = dma.hbm_to_vmem [thread:$0]  (!%p1579_p6), %s1946_s2, 16, %s295_s25, [#allocation6]  }
  0x95   : > { %s1474_s23 = smov [#allocation10]   ;;  %s1475_s15 = smov [#allocation13]  }
  0x96   : > { %s318_s9 = sshll.u32 %s1474_s23, 4  ;;  %s339_s26 = sshll.u32 %s1475_s15, 4  ;;  %s319_s9 = int_to_ptr.vmem [resolvable:$true] %s318_s9  ;;  %s340_s26 = int_to_ptr.vmem [resolvable:$true] %s339_s26 }
  0x97   : > { %s1253_s21 = scalar_lea.hbm %s1922_s4, 16 }
  0x98   : > { %p1254_p7 = scmp.ne.s32.totalorder %s1922_s4, %s1253_s21  ;;  %p1260_p1 = scmp.lt.u32.totalorder %s1253_s21, %s1922_s4 }
  0x9a   : > { %p1256_p9 = pnand %p1254_p7, %p1595_p8 }
  0x9c   : > { %p1257_p4 = pneg %p1256_p9 }
  0x9e   : > { %p1262_p3 = pnand %p1260_p1, %p1257_p4 }
  0xa0   : > { %1265 = shalt.err (!%p1262_p3)
}
  0xa1   : > { %s1266_s25 = scalar_lea.vmem %s319_s9, 16  ;;  %s1273_s1 = scalar_lea.vmem %s319_s9, 32 }
  0xa2   : > { %p1267_p10 = scmp.ne.s32.totalorder %s319_s9, %s1266_s25  ;;  %p1274_p13 = scmp.lt.s32.totalorder %s319_s9, %s319_s9 }
  0xa3   : > { %p1275_p0 = scmp.lt.s32.totalorder %s1273_s1, %s1266_s25 }
  0xa4   : > { %p1269_p11 = pnand %p1267_p10, %p1595_p8 }
  0xa5   : > { %p1276_p2 = por %p1275_p0, %p1274_p13 }
  0xa6   : > { %p1270_p12 = pneg %p1269_p11 }
  0xa8   : > { %p1277_p5 = pnand %p1276_p2, %p1270_p12 }
  0xaa   : > { %1280 = shalt.err (!%p1277_p5)
}
  0xab   : > { %998 = dma.hbm_to_vmem [thread:$0]  (!%p1579_p6), %s1922_s4, 16, %s319_s9, [#allocation9]  }
  0xac   : > { %s1281_s21 = scalar_lea.hbm %s1924_s6, 512 }
  0xad   : > { %p1282_p7 = scmp.ne.s32.totalorder %s1924_s6, %s1281_s21  ;;  %p1288_p1 = scmp.lt.u32.totalorder %s1281_s21, %s1924_s6 }
  0xaf   : > { %p1284_p9 = pnand %p1282_p7, %p1595_p8 }
  0xb1   : > { %p1285_p4 = pneg %p1284_p9 }
  0xb3   : > { %p1290_p3 = pnand %p1288_p1, %p1285_p4 }
  0xb5   : > { %1293 = shalt.err (!%p1290_p3)
}
  0xb6   : > { %s1294_s25 = scalar_lea.vmem %s340_s26, 512  ;;  %p1302_p13 = scmp.lt.s32.totalorder %s340_s26, %s340_s26 }
  0xb7   : > { %p1295_p10 = scmp.ne.s32.totalorder %s340_s26, %s1294_s25  ;;  %p1303_p0 = scmp.lt.s32.totalorder %s1294_s25, %s1294_s25 }
  0xb9   : > { %p1297_p11 = pnand %p1295_p10, %p1595_p8  ;;  %p1304_p2 = por %p1303_p0, %p1302_p13 }
  0xbb   : > { %p1298_p12 = pneg %p1297_p11 }
  0xbd   : > { %p1305_p5 = pnand %p1304_p2, %p1298_p12 }
  0xbf   : > { %1308 = shalt.err (!%p1305_p5)
}
  0xc0   : > { %s1947_s9 = smov 4   ;;  %s1948_s1 = smov 64  }
  0xc1   : > { %1004 = dma.hbm_to_vmem [thread:$0]  (!%p1579_p6), %s1924_s6, 512, %s340_s26, [#allocation12], %s1948_s1, %s1948_s1, %s1947_s9  }
  0xc2   : > { %s1476_s19 = smov [#allocation16]   ;;  %s1309_s24 = scalar_lea.hbm %s1926_s8, 16 }
  0xc3   : > { %s364_s28 = sshll.u32 %s1476_s19, 4  ;;  %p1310_p7 = scmp.ne.s32.totalorder %s1926_s8, %s1309_s24  ;;  %s365_s28 = int_to_ptr.vmem [resolvable:$true] %s364_s28 }
  0xc4   : > { %p1316_p1 = scmp.lt.u32.totalorder %s1309_s24, %s1926_s8 }
  0xc5   : > { %p1312_p9 = pnand %p1310_p7, %p1595_p8 }
  0xc7   : > { %p1313_p4 = pneg %p1312_p9 }
  0xc9   : > { %p1318_p3 = pnand %p1316_p1, %p1313_p4 }
  0xcb   : > { %1321 = shalt.err (!%p1318_p3)
}
  0xcc   : > { %s1322_s26 = scalar_lea.vmem %s365_s28, 16  ;;  %s1329_s9 = scalar_lea.vmem %s365_s28, 32 }
  0xcd   : > { %p1323_p10 = scmp.ne.s32.totalorder %s365_s28, %s1322_s26  ;;  %p1330_p13 = scmp.lt.s32.totalorder %s365_s28, %s365_s28 }
  0xce   : > { %p1331_p0 = scmp.lt.s32.totalorder %s1329_s9, %s1322_s26 }
  0xcf   : > { %p1325_p11 = pnand %p1323_p10, %p1595_p8 }
  0xd0   : > { %p1332_p2 = por %p1331_p0, %p1330_p13 }
  0xd1   : > { %p1326_p12 = pneg %p1325_p11 }
  0xd3   : > { %p1333_p5 = pnand %p1332_p2, %p1326_p12 }
  0xd5   : > { %1336 = shalt.err (!%p1333_p5)
}
  0xd6   : > { %1010 = dma.hbm_to_vmem [thread:$0]  (!%p1579_p6), %s1926_s8, 16, %s365_s28, [#allocation15]  }
  0xd7   : > { %s879_s2 = sadd.s32 4294967294, %s1465_s14   ;;  %s41_s18 = sadd.s32 1, %s1461_s13 }
  0xd8   : > { %p43_p8 = scmp.ge.s32.totalorder %s41_s18, 2  ;;  %s50_s22 = sadd.s32 1, %s1453_s11 }
  0xd9   : > { %p57_p7 = scmp.ne.s32.totalorder %s1453_s11, %s1449_s10  ;;  %p58_p9 = scmp.eq.s32.totalorder %s1465_s14, 0 }
  0xda   : > { %s1968_s18 = smov (%p43_p8, %s41_s18), 0  ;;  %p63_p1 = scmp.ne.s32.totalorder %s1449_s10, %s1445_s30 }
  0xdb   : > { %p1757_p4 = por %p58_p9, %p57_p7  ;;  %s45_s19 = ssub.s32 %s1461_s13, %s1968_s18 }
  0xdc   : > { %s1950_s28 = sadd.s32 4294967295, %s1465_s14   ;;  %p48_p3 = scmp.eq.s32.totalorder %s45_s19, 0 }
  0xdd   : > { %p257_p6 = scmp.eq.s32.totalorder %s1950_s28, 1  ;;  %p1951_p10 = scmp.ne.s32.totalorder %s1940_s16, 0 }
  0xde   : > { %p263_p13 = scmp.eq.s32.totalorder %s879_s2, 1  ;;  %p1027_p2 = scmp.lt.s32.totalorder %s1465_s14, 2 }
  0xdf   : > { %p1769_p11 = por %p1951_p10, %p63_p1  ;;  %p1773_p12 = por %p257_p6, %p57_p7 }
  0xe0   : > { %s1778_s24 = scalar_select %p48_p3, %s1453_s11, %s50_s22  }
  0xe1   : > { %s1953_s29 = scalar_select %p1773_p12, 1, 0 }
  0xe2   : > { %p1780_p0 = por %p263_p13, %p63_p1  ;;  %s375_s27 = sand.u32 1, %s1453_s11  }
  0xe3   : > { %s891_s25 = sshll.u32 %s1461_s13, 7  ;;  %s890_s26 = sshll.u32 %s375_s27, 3 }
  0xe4   : > { %s1954_s20 = scalar_select %p1780_p0, 1, 0 }
  0xe5   : > { %s1790_s23 = scalar_lea.hbm %s1918_s0, %s891_s25  ;;  %s379_s2 = scalar_lea.vmem [#allocation2], %s890_s26 }
  0xe6   : > { %s387_s22 = sshll.u32 %s379_s2, 4  ;;  %p1794_p5 = pnand %p1027_p2, %p1757_p4  ;;  %s1798_s22 = int_to_ptr.vmem [resolvable:$true] %s387_s22 }
  0xe7   : > { %s376_s28 = scalar_lea.sflag [#allocation3], %s375_s27  ;;  %s1337_s3 = scalar_lea.hbm %s1790_s23, 128 }
  0xe8   : > { %p1338_p8 = scmp.ne.s32.totalorder %s1790_s23, %s1337_s3  ;;  %p1339_p7 = pneg %p1794_p5 }
  0xe9   : > { %s1342_s15 = scalar_lea.hbm %s1918_s0, 256  ;;  %p1343_p4 = scmp.lt.u32.totalorder %s1790_s23, %s1918_s0 }
  0xea   : > { %p1340_p9 = pnand %p1339_p7, %p1338_p8  ;;  %p1344_p6 = scmp.lt.u32.totalorder %s1342_s15, %s1337_s3 }
  0xeb   : > { %p1346_p10 = scmp.lt.u32.totalorder %s1337_s3, %s1790_s23 }
  0xec   : > { %p1341_p1 = pneg %p1340_p9  ;;  %p1345_p3 = por %p1344_p6, %p1343_p4 }
  0xee   : > { %p1347_p13 = por %p1346_p10, %p1345_p3 }
  0xf0   : > { %p1348_p2 = pnand %p1347_p13, %p1341_p1 }
  0xf2   : > { %1351 = shalt.err (!%p1348_p2)
}
  0xf3   : > { %s1352_s27 = scalar_lea.vmem %s1798_s22, 128  ;;  %s1477_s2 = smov [#allocation2]  }
  0xf4   : > { %p1353_p8 = scmp.ne.s32.totalorder %s1798_s22, %s1352_s27  ;;  %s1357_s25 = sshll.u32 %s1477_s2, 4  ;;  %s1358_s25 = int_to_ptr.vmem [resolvable:$false] %s1357_s25 }
  0xf5   : > { %s1359_s26 = scalar_lea.vmem %s1358_s25, 256  ;;  %p1360_p12 = scmp.lt.s32.totalorder %s1798_s22, %s1358_s25 }
  0xf6   : > { %p1355_p9 = pnand %p1353_p8, %p1339_p7  ;;  %p1361_p4 = scmp.lt.s32.totalorder %s1359_s26, %s1352_s27 }
  0xf8   : > { %p1356_p0 = pneg %p1355_p9  ;;  %p1362_p6 = por %p1361_p4, %p1360_p12 }
  0xfa   : > { %p1363_p3 = pnand %p1362_p6, %p1356_p0 }
  0xfc   : > { %1366 = shalt.err (!%p1363_p3)
}
  0xfd   : > { %1014 = dma.hbm_to_vmem [thread:$0]  (!%p1794_p5), %s1790_s23, 128, %s1798_s22, %s376_s28  }
  0xfe   : > { %p1956_p1 = scmp.ne.s32.totalorder %s1941_s17, 0 }
  0xff   : > { %s1828_s3 = sand.u32 (!%p1956_p1), 1, %s1449_s10  }
 0x100   : > { %396 = sbr.rel (%p1956_p1) target bundleno = 1069 (0x42d), region = 56  ;;  %s893_s15 = sshll.u32 (!%p1956_p1), %s1828_s3, 3 }
 0x101   : > { %s399_s9 = scalar_lea.sflag (!%p1956_p1), [#allocation3], %s1828_s3  ;;  %s402_s1 = scalar_lea.vmem (!%p1956_p1), [#allocation2], %s893_s15 }
 0x107   : > { %1420 = dma.done.wait (%p1769_p11), %s399_s9, 128  }
 0x108   : > { %1422 = vsyncadd (%p1769_p11), %s399_s9, 4294967168  ;;  %p1957_p12 = scmp.ne.s32.totalorder %s1940_s16, 0 }
 0x10a   : > { %1424 = dma.done.wait (%p1957_p12), [#allocation6], 32  }
 0x10b   : > { %1426 = vsyncadd (%p1957_p12), [#allocation6], 4294967264 }
 0x10c   : > { %1428 = dma.done.wait (%p1957_p12), [#allocation9], 272  }
 0x10d   : > { %1430 = vsyncadd (%p1957_p12), [#allocation9], 4294967024 }
 0x10e   : > { %1432 = dma.done.wait (%p1957_p12), [#allocation12], 528  }
 0x10f   : > { %1434 = vsyncadd (%p1957_p12), [#allocation12], 4294966768 }
 0x110   : > { %1436 = dma.done.wait (%p1957_p12), [#allocation15], 32  }
 0x111   : > { %1438 = vsyncadd (%p1957_p12), [#allocation15], 4294967264  ;;  %vm473_vm0 = vcmask 258048   ;;  %v1854_v0 = vld [vmem:[%s402_s1] sm:$0x1f]  ;;  %v1097_v7 = vld [vmem:[#allocation8] sm:$0xff]  }
 0x112   : > { %v474_v1 = vsel %vm473_vm0, %v1854_v0, 0.0  ;;  %v1478_v8 = vmov 0.0   ;;  %v1098_v9 = vld [vmem:[#allocation8 + $0x8] sm:$0xff]   ;;  %vm1479_vm1 = vmmov 0   ;;  %v903_v14 = vld [vmem:[#allocation5] ss:$0 sm:$0xff] }
 0x113   : > { %475 = vadd.xlane.f32.xlu0 %v474_v1  ;;  %930 = vmatprep.subr.bf16.mxu0 %v1478_v8  ;;  %v904_v16 = vld [vmem:[#allocation7] ss:$0 sm:$0xff]  ;;  %vm539_vm2 = vcmask 261120   ;;  %v1099_v22 = vld [vmem:[#allocation13] sm:$0xff]   ;;  %v1101_v24 = vld [vmem:[#allocation13 + $0x10] sm:$0xff]   ;;  %vm653_vm5 = vcmask 523264  }
 0x114   : > { %938 = vmatprep.subr.bf16.mxu1 %v1478_v8  ;;  %931 = vmatpush3.bf16.msra.mxu0 %v1097_v7  ;;  %v1100_v23 = vld [vmem:[#allocation13 + $0x8] sm:$0xff]   ;;  %v1102_v25 = vld [vmem:[#allocation13 + $0x18] sm:$0xff]   ;;  %vm600_vm6 = vcmask 520192   ;;  %v911_v58 = vld [vmem:[#allocation14] ss:$0 sm:$0xff]  ;;  %s919_s16 = sshll.u32 %s1457_s12, 7 }
 0x115   : > { %934 = vmatprep.mubr.msk.bf16.mxu0 %vm1479_vm1, %v1478_v8  ;;  %932 = vmatprep.subr.bf16.mxu0 %v1478_v8  ;;  %v905_v33 = vld [vmem:[#allocation10] ss:$0 sm:$0xff]  ;;  %v909_v36 = vld [vmem:[#allocation11] ss:$0 sm:$0xff]  ;;  %v917_v61 = vld [vmem:[#allocation16] ss:$0 sm:$0xff] }
 0x116   : > { %946 = vmatprep.mubr.msk.bf16.mxu1 %vm1479_vm1, %v1478_v8  ;;  %939 = vmatpush3.bf16.msra.mxu1 %v1099_v22  ;;  %s468_s17 = scalar_lea.vmem [#allocation17], %s893_s15  ;;  %s1958_s19 = sld [smem:[#allocation27_spill]] }
 0x117   : > { %940 = vmatprep.subr.bf16.mxu1 %v1478_v8  ;;  %s722_s21 = sshll.u32 %s468_s17, 4  ;;  %s708_s12 = scalar_lea.sflag [#allocation4], %s1828_s3  ;;  %s1870_s21 = int_to_ptr.vmem [resolvable:$true] %s722_s21 }
 0x118   : > { %933 = vmatpush3.bf16.msra.mxu0 %v1098_v9  ;;  %s1367_s27 = scalar_lea.vmem %s1870_s21, 128  ;;  %p1959_p0 = scmp.ne.s32.totalorder %s1953_s29, 0 }
 0x119   : > { %p1368_p11 = scmp.ne.s32.totalorder %s1870_s21, %s1367_s27  ;;  %s1480_s2 = smov [#allocation17]  }
 0x11a   : > { %941 = vmatpush3.bf16.msra.mxu1 %v1100_v23  ;;  %s1371_s25 = sshll.u32 %s1480_s2, 4  ;;  %s1372_s25 = int_to_ptr.vmem [resolvable:$false] %s1371_s25 }
 0x11b   : > { %942 = vmatprep.subr.bf16.mxu1 %v1478_v8  ;;  %p1369_p5 = pnand %p1368_p11, %p1959_p0  ;;  %s1373_s26 = scalar_lea.vmem %s1372_s25, 256 }
 0x11c   : > { %s1868_s28 = scalar_lea.hbm %s1958_s19, %s919_s16  ;;  %p1374_p10 = scmp.lt.s32.totalorder %s1870_s21, %s1372_s25 }
 0x11d   : > { %p1370_p7 = pneg %p1369_p5  ;;  %p1375_p13 = scmp.lt.s32.totalorder %s1373_s26, %s1367_s27 }
 0x11e   : > { %943 = vmatpush3.bf16.msra.mxu1 %v1101_v24 }
 0x11f   : > { %944 = vmatprep.subr.bf16.mxu1 %v1478_v8  ;;  %p1376_p2 = por %p1375_p13, %p1374_p10 }
 0x121   : > { %p1377_p8 = pnand %p1376_p2, %p1370_p7 }
 0x122   : > { %945 = vmatpush3.bf16.msra.mxu1 %v1102_v25 }
 0x1a0   : > { %v476_v2 = vpop.xlane.xlu0 %475 }
 0x1a1   : > { %v478_v3 = vmul.f32 0.03125, %v476_v2 }
 0x1a3   : > { %v479_v4 = vsub.f32 %v1854_v0, %v478_v3 }
 0x1a5   : > { %v480_v5 = vmul.f32 %v479_v4, %v479_v4 }
 0x1a7   : > { %v481_v6 = vsel %vm473_vm0, %v480_v5, 0.0 }
 0x1a8   : > { %482 = vadd.xlane.f32.xlu0 %v481_v6 }
 0x235   : > { %v483_v10 = vpop.xlane.xlu0 %482 }
 0x236   : > { %v484_v11 = vmul.f32 0.03125, %v483_v10 }
 0x238   : > { %v485_v12 = vadd.f32 1e-05, %v484_v11 }
 0x23a   : > { %1103 = vrsqrt.f32 %v485_v12 }
 0x244   : > { %v1104_v13 = vpop.eup %1103 }
 0x245   : > { %v487_v15 = vmul.f32 %v1104_v13, %v479_v4 }
 0x247   : > { %v494_v17 = vmul.f32 %v903_v14, %v487_v15 }
 0x249   : > { %v501_v18 = vadd.f32 %v904_v16, %v494_v17 }
 0x24b   : > { %v514_v19 = vpack.c.bf16 %v501_v18, %v501_v18  ;;  %v502_v20 = vmul.f32 %v501_v18, %v501_v18 }
 0x24d   : > { %935 = vmatmul.mubr.msk.bf16.vlgmr.msra.gmra.mrb[0].mxu0 %vm539_vm2, %v514_v19  ;;  %v503_v21 = vsel %vm473_vm0, %v502_v20, 0.0 }
 0x24e   : > { %504 = vadd.xlane.f32.xlu1 %v503_v21 }
 0x2db   : > { %v505_v26 = vpop.xlane.xlu1 %504 }
 0x2dc   : > { %v506_v27 = vadd.f32 1.0, %v505_v26 }
 0x2de   : > { %1105 = vrsqrt.f32 %v506_v27  ;;  %vm509_vm3 = vcmp.eq.f32.partialorder %v506_v27, inf  ;;  %v512_v31 = vand.u32 2147483648, %v506_v27  ;;  %vm511_vm4 = vcmp.eq.f32.partialorder %v506_v27, 0.0 }
 0x2e8   : > { %v1106_v28 = vpop.eup %1105 }
 0x2e9   : > { %v508_v29 = vmul.f32 %v1106_v28, %v506_v27 }
 0x2eb   : > { %v510_v30 = vsel %vm509_vm3, %v506_v27, %v508_v29 }
 0x2ec   : > { %v513_v32 = vsel %vm511_vm4, %v512_v31, %v510_v30 }
 0x2ed   : > { %v526_v34 = vmul.f32 %v905_v33, %v513_v32 }
 0x320   : > { %v577_v35 = vpop.f32.mrb[0].mxu0 }
 0x321   : > { %v578_v37 = vadd.f32 %v577_v35, %v526_v34  ;;  %v936_v38 = vpop.f32.mrb[1].mxu0 }
 0x322   : > { %v580_v39 = vpop.f32.mrb[2].mxu0 }
 0x323   : > { %v590_v40 = vadd.f32 %v909_v36, %v578_v37  ;;  %v937_v41 = vpop.f32.mrb[3].mxu0 }
 0x325   : > { %v910_v42 = vmul.f32 -1.702, %v590_v40 }
 0x327   : > { %v593_v43 = vmul.f32 1.442695, %v910_v42 }
 0x329   : > { %1107 = vpow2.f32 %v593_v43 }
 0x333   : > { %v1108_v44 = vpop.eup %1107 }
 0x334   : > { %v595_v45 = vadd.f32 1.0, %v1108_v44 }
 0x336   : > { %1109 = vrcp.f32 %v595_v45 }
 0x340   : > { %v1110_v46 = vpop.eup %1109 }
 0x341   : > { %v598_v47 = vmul.f32 %v1110_v46, %v590_v40 }
 0x343   : > { %v612_v48 = vpack.c.bf16 %v598_v47, %v598_v47  ;;  %v599_v49 = vmul.f32 %v598_v47, %v598_v47 }
 0x345   : > { %947 = vmatmul.mubr.msk.bf16.vlgmr.msra.gmra.mrb[0].mxu1 %vm653_vm5, %v612_v48  ;;  %v601_v50 = vsel %vm600_vm6, %v599_v49, 0.0 }
 0x346   : > { %602 = vadd.xlane.f32.xlu1 %v601_v50 }
 0x3d3   : > { %v603_v51 = vpop.xlane.xlu1 %602 }
 0x3d4   : > { %v604_v52 = vadd.f32 1.0, %v603_v51 }
 0x3d6   : > { %1111 = vrsqrt.f32 %v604_v52  ;;  %vm607_vm7 = vcmp.eq.f32.partialorder %v604_v52, inf  ;;  %v610_v56 = vand.u32 2147483648, %v604_v52  ;;  %vm609_vm8 = vcmp.eq.f32.partialorder %v604_v52, 0.0 }
 0x3e0   : > { %v1112_v53 = vpop.eup %1111 }
 0x3e1   : > { %v606_v54 = vmul.f32 %v1112_v53, %v604_v52 }
 0x3e3   : > { %v608_v55 = vsel %vm607_vm7, %v604_v52, %v606_v54 }
 0x3e4   : > { %v611_v57 = vsel %vm609_vm8, %v610_v56, %v608_v55 }
 0x3e5   : > { %v628_v59 = vmul.f32 %v911_v58, %v611_v57 }
 0x418   : > { %v691_v60 = vpop.f32.mrb[0].mxu1 }
 0x419   : > { %v692_v62 = vadd.f32 %v691_v60, %v628_v59  ;;  %v948_v63 = vpop.f32.mrb[1].mxu1 }
 0x41a   : > { %v694_v1 = vpop.f32.mrb[2].mxu1 }
 0x41b   : > { %v704_v2 = vadd.f32 %v917_v61, %v692_v62  ;;  %v949_v3 = vpop.f32.mrb[3].mxu1 }
 0x41d   : > { %v705_v4 = vadd.f32 %v704_v2, %v1854_v0 }
 0x41f   : > { %706 = vst.msk [vmem:[%s468_s17] sm:$0x1f] %vm473_vm0, %v705_v4 }
 0x420   : > { %1380 = shalt.err (!%p1377_p8)
}
 0x421   : > { %s1381_s3 = scalar_lea.hbm %s1868_s28, 128  ;;  %s1385_s1 = scalar_lea.hbm %s1958_s19, 256 }
 0x422   : > { %p1382_p9 = scmp.ne.s32.totalorder %s1868_s28, %s1381_s3  ;;  %p1386_p3 = scmp.lt.u32.totalorder %s1868_s28, %s1958_s19 }
 0x423   : > { %p1387_p1 = scmp.lt.u32.totalorder %s1385_s1, %s1381_s3  ;;  %p1389_p11 = scmp.lt.u32.totalorder %s1381_s3, %s1868_s28 }
 0x424   : > { %p1383_p4 = pnand %p1382_p9, %p1959_p0 }
 0x425   : > { %p1388_p12 = por %p1387_p1, %p1386_p3 }
 0x426   : > { %p1384_p6 = pneg %p1383_p4 }
 0x427   : > { %p1390_p5 = por %p1389_p11, %p1388_p12 }
 0x429   : > { %p1391_p7 = pnand %p1390_p5, %p1384_p6 }
 0x42b   : > { %1394 = shalt.err (!%p1391_p7)
}
 0x42c   : > { %984 = dma.vmem_to_hbm [thread:$0]  (%p1959_p0), %s1870_s21, 128, %s1868_s28, %s708_s12  }
 0x42d PF: > { %s734_s23 = sand.u32 1, %s1445_s30   ;;  %p1960_p10 = scmp.ne.s32.totalorder %s1954_s20, 0 }
 0x42e   : > { %p1961_p13 = scmp.ge.s32.totalorder %s1465_s14, 2  ;;  %s735_s22 = scalar_lea.sflag [#allocation4], %s734_s23 }
 0x430   : > { %p1016_p2 = pnand %p1961_p13, %p1960_p10 }
 0x432   : > { %1440 = dma.done.wait (!%p1016_p2), %s735_s22, 128  }
 0x433   : > { %1442 = vsyncadd (!%p1016_p2), %s735_s22, 4294967168  ;;  %s29_s14 = sadd.s32 1, %s1465_s14   ;;  %s1962_s30 = smov %s1449_s10 }
 0x434   : > { %p26_p8 = scmp.ge.s32.totalorder %s29_s14, 4   ;;  %s1963_s10 = smov %s1453_s11 }
 0x435   : > { %s1964_s11 = smov %s1778_s24  ;;  %s1965_s12 = smov %s1461_s13 }
 0x436   : > { %s1966_s13 = smov %s1968_s18  ;;  %28 = sbr.rel (!%p26_p8) target bundleno = 15 (0xf), region = 133 }
 0x43d   :  { %740 = vsyncpa [#allocation3], 1 }
 0x43e   :  { %742 = vsyncpa [#allocation3 + $0x1], 1 }
 0x43f   :  { %743 = vsyncpa [#allocation6], 1 }
 0x440   :  { %744 = vsyncpa [#allocation9], 1 }
 0x441   :  { %745 = vsyncpa [#allocation12], 1 }
 0x442   :  { %746 = vsyncpa [#allocation15], 1 }
 0x443   :  { %747 = vsyncpa [#allocation4], 1 }
 0x444   :  { %749 = vsyncpa [#allocation4 + $0x1], 1 }

// kernel: hyp_clip_vision_forward.8
= control target key start
LH: loop header
LB: loop body
LE: loop exit
PB: predicated region body
PF: predicated region fallthrough
CT: control target
= control target key end

     0   :  { %s2303_s0 = inlined_call_operand.hbm [shape: f32[2,5,32], index: 0, kind: input, shape index: {}]   ;;  %s2304_s1 = inlined_call_operand.hbm [shape: f32[1,32], index: 1, kind: input, shape index: {}]   ;;  %s2305_s2 = inlined_call_operand.hbm [shape: f32[1,32], index: 2, kind: input, shape index: {}]   ;;  %s2306_s3 = inlined_call_operand.hbm [shape: bf16[32,96], index: 3, kind: input, shape index: {}]   ;;  %s2307_s4 = inlined_call_operand.hbm [shape: f32[1,96], index: 4, kind: input, shape index: {}]   ;;  %s2308_s5 = inlined_call_operand.hbm [shape: f32[1,96], index: 5, kind: input, shape index: {}]   ;;  %s2309_s6 = inlined_call_operand.hbm [shape: bf16[32,32], index: 6, kind: input, shape index: {}]   ;;  %s2310_s7 = inlined_call_operand.hbm [shape: f32[2,32], index: 7, kind: input, shape index: {}]   ;;  %s2311_s8 = inlined_call_operand.hbm [shape: f32[1,32], index: 8, kind: input, shape index: {}]   ;;  %s2312_s9 = inlined_call_operand.hbm [shape: f32[2,5,32], index: 9, kind: output, shape index: {}]  }
   0x1   :  { %2318 = sst [smem:[#allocation24_spill]] %s2304_s1 }
   0x2   :  { %2319 = sst [smem:[#allocation25_spill]] %s2305_s2 }
   0x3   :  { %14 = vsyncpa [#allocation3], 0 }
   0x4   :  { %16 = vsyncpa [#allocation3 + $0x1], 0 }
   0x5   :  { %17 = vsyncpa [#allocation6], 0 }
   0x6   :  { %18 = vsyncpa [#allocation9], 0 }
   0x7   :  { %19 = vsyncpa [#allocation12], 0 }
   0x8   :  { %20 = vsyncpa [#allocation15], 0 }
   0x9   :  { %21 = vsyncpa [#allocation4], 0 }
   0xa   :  { %23 = vsyncpa [#allocation4 + $0x1], 0  ;;  %s1872_s30 = smov 0   ;;  %s1874_s10 = smov 0  }
   0xb   :  { %s1876_s11 = smov 0   ;;  %s1878_s12 = smov 0  }
   0xc LB: > { %s1800_s13 = smov [#allocation5]   ;;  %s1893_s15 = sadd.s32 4294967295, %s1798_s12   ;;  %s1798_s12 = sphi %s1878_s12, %s2348_s12   ;;  %s1794_s11 = sphi %s1876_s11, %s2347_s11   ;;  %s1790_s10 = sphi %s1874_s10, %s2346_s10   ;;  %s1786_s30 = sphi %s1872_s30, %s2345_s30  }
   0xd   : > { %s267_s14 = sshll.u32 %s1800_s13, 4  ;;  %p1183_p0 = scmp.ge.s32.totalorder %s1798_s12, 1  ;;  %s1898_s14 = int_to_ptr.vmem [resolvable:$true] %s267_s14 }
   0xe   : > { %p2315_p1 = scmp.eq.s32.totalorder %s1893_s15, 0  ;;  %p254_p2 = scmp.lt.s32.totalorder %s1798_s12, 3 }
   0xf   : > { %s1801_s17 = smov [#allocation8]   ;;  %s1802_s20 = smov [#allocation11]  }
  0x10   : > { %p1900_p3 = pnand %p1183_p0, %p254_p2  ;;  %s288_s18 = sshll.u32 %s1801_s17, 4  ;;  %s1907_s18 = int_to_ptr.vmem [resolvable:$true] %s288_s18 }
  0x11   : > { %s313_s21 = sshll.u32 %s1802_s20, 4  ;;  %s2322_s1 = sld [smem:[#allocation24_spill]]  ;;  %s1915_s21 = int_to_ptr.vmem [resolvable:$true] %s313_s21 }
  0x12   : > { %s2320_s16 = scalar_select %p1900_p3, 1, 0 }
  0x13   : > { %p1329_p5 = pneg %p1900_p3 }
  0x15   : > { %p1911_p6 = pnand %p1329_p5, %p2315_p1 }
  0x17   : > { %s1462_s24 = scalar_lea.hbm %s2322_s1, 16  ;;  %p1925_p8 = pneg %p1911_p6 }
  0x18   : > { %p1463_p7 = scmp.ne.s32.totalorder %s2322_s1, %s1462_s24  ;;  %p1469_p11 = scmp.lt.u32.totalorder %s1462_s24, %s2322_s1 }
  0x1a   : > { %p1465_p9 = pnand %p1925_p8, %p1463_p7 }
  0x1c   : > { %p1466_p10 = pneg %p1465_p9 }
  0x1e   : > { %p1471_p12 = pnand %p1469_p11, %p1466_p10 }
  0x20   : > { %1474 = shalt.err (!%p1471_p12)
}
  0x21   : > { %s1475_s13 = scalar_lea.vmem %s1898_s14, 16  ;;  %s1482_s17 = scalar_lea.vmem %s1898_s14, 32 }
  0x22   : > { %p1476_p13 = scmp.ne.s32.totalorder %s1898_s14, %s1475_s13  ;;  %p1483_p5 = scmp.lt.s32.totalorder %s1898_s14, %s1898_s14 }
  0x23   : > { %p1484_p7 = scmp.lt.s32.totalorder %s1482_s17, %s1475_s13 }
  0x24   : > { %p1478_p0 = pnand %p1476_p13, %p1925_p8 }
  0x25   : > { %p1485_p9 = por %p1484_p7, %p1483_p5 }
  0x26   : > { %p1479_p2 = pneg %p1478_p0 }
  0x28   : > { %p1486_p4 = pnand %p1485_p9, %p1479_p2 }
  0x2a   : > { %1489 = shalt.err (!%p1486_p4)
}
  0x2b   : > { %1332 = dma.hbm_to_vmem [thread:$0]  (!%p1911_p6), %s2322_s1, 16, %s1898_s14, [#allocation6]  }
  0x2c   : > { %s1490_s25 = scalar_lea.hbm %s2306_s3, 256 }
  0x2d   : > { %p1491_p10 = scmp.ne.s32.totalorder %s2306_s3, %s1490_s25  ;;  %p1497_p4 = scmp.lt.u32.totalorder %s1490_s25, %s2306_s3 }
  0x2f   : > { %p1493_p11 = pnand %p1491_p10, %p1925_p8 }
  0x31   : > { %p1494_p12 = pneg %p1493_p11 }
  0x33   : > { %p1499_p13 = pnand %p1497_p4, %p1494_p12 }
  0x35   : > { %1502 = shalt.err (!%p1499_p13)
}
  0x36   : > { %s1503_s14 = scalar_lea.vmem %s1907_s18, 256  ;;  %p1511_p7 = scmp.lt.s32.totalorder %s1907_s18, %s1907_s18 }
  0x37   : > { %p1504_p0 = scmp.ne.s32.totalorder %s1907_s18, %s1503_s14  ;;  %p1512_p9 = scmp.lt.s32.totalorder %s1503_s14, %s1503_s14 }
  0x39   : > { %p1506_p2 = pnand %p1504_p0, %p1925_p8  ;;  %p1513_p10 = por %p1512_p9, %p1511_p7 }
  0x3b   : > { %p1507_p5 = pneg %p1506_p2 }
  0x3d   : > { %p1514_p11 = pnand %p1513_p10, %p1507_p5 }
  0x3f   : > { %1517 = shalt.err (!%p1514_p11)
}
  0x40   : > { %s2313_s17 = smov 64   ;;  %s2314_s20 = smov 4  }
  0x41   : > { %1338 = dma.hbm_to_vmem [thread:$0]  (!%p1911_p6), %s2306_s3, 256, %s1907_s18, [#allocation9], %s2313_s17, %s2313_s17, %s2314_s20  }
  0x42   : > { %s1518_s26 = scalar_lea.hbm %s2308_s5, 16 }
  0x43   : > { %p1519_p12 = scmp.ne.s32.totalorder %s2308_s5, %s1518_s26  ;;  %p1525_p0 = scmp.lt.u32.totalorder %s1518_s26, %s2308_s5 }
  0x45   : > { %p1521_p4 = pnand %p1519_p12, %p1925_p8 }
  0x47   : > { %p1522_p13 = pneg %p1521_p4 }
  0x49   : > { %p1527_p2 = pnand %p1525_p0, %p1522_p13 }
  0x4b   : > { %1530 = shalt.err (!%p1527_p2)
}
  0x4c   : > { %s1531_s18 = scalar_lea.vmem %s1915_s21, 16  ;;  %s1538_s22 = scalar_lea.vmem %s1915_s21, 32 }
  0x4d   : > { %p1532_p5 = scmp.ne.s32.totalorder %s1915_s21, %s1531_s18  ;;  %p1539_p10 = scmp.lt.s32.totalorder %s1915_s21, %s1915_s21 }
  0x4e   : > { %p1540_p11 = scmp.lt.s32.totalorder %s1538_s22, %s1531_s18 }
  0x4f   : > { %p1534_p7 = pnand %p1532_p5, %p1925_p8 }
  0x50   : > { %p1541_p12 = por %p1540_p11, %p1539_p10 }
  0x51   : > { %p1535_p9 = pneg %p1534_p7 }
  0x53   : > { %p1542_p4 = pnand %p1541_p12, %p1535_p9 }
  0x55   : > { %1545 = shalt.err (!%p1542_p4)
}
  0x56   : > { %1344 = dma.hbm_to_vmem [thread:$0]  (!%p1911_p6), %s2308_s5, 16, %s1915_s21, [#allocation12]  }
  0x57   : > { %s1805_s25 = smov [#allocation14]   ;;  %s1806_s28 = smov [#allocation7]  }
  0x58   : > { %s337_s26 = sshll.u32 %s1805_s25, 4  ;;  %s278_s29 = sshll.u32 %s1806_s28, 4  ;;  %s338_s26 = int_to_ptr.vmem [resolvable:$true] %s337_s26  ;;  %s279_s29 = int_to_ptr.vmem [resolvable:$true] %s278_s29 }
  0x59   : > { %s1546_s18 = scalar_lea.hbm %s2310_s7, 32 }
  0x5a   : > { %p1547_p13 = scmp.ne.s32.totalorder %s2310_s7, %s1546_s18  ;;  %p1553_p5 = scmp.lt.u32.totalorder %s1546_s18, %s2310_s7 }
  0x5c   : > { %p1549_p0 = pnand %p1547_p13, %p1925_p8 }
  0x5e   : > { %p1550_p2 = pneg %p1549_p0 }
  0x60   : > { %p1555_p7 = pnand %p1553_p5, %p1550_p2 }
  0x62   : > { %1558 = shalt.err (!%p1555_p7)
}
  0x63   : > { %s1559_s21 = scalar_lea.vmem %s338_s26, 32  ;;  %p1567_p12 = scmp.lt.s32.totalorder %s338_s26, %s338_s26 }
  0x64   : > { %p1560_p9 = scmp.ne.s32.totalorder %s338_s26, %s1559_s21  ;;  %p1568_p4 = scmp.lt.s32.totalorder %s1559_s21, %s1559_s21 }
  0x66   : > { %p1562_p10 = pnand %p1560_p9, %p1925_p8  ;;  %p1569_p1 = por %p1568_p4, %p1567_p12 }
  0x68   : > { %p1563_p11 = pneg %p1562_p10 }
  0x6a   : > { %p1570_p3 = pnand %p1569_p1, %p1563_p11 }
  0x6c   : > { %1573 = shalt.err (!%p1570_p3)
}
  0x6d   : > { %1350 = dma.hbm_to_vmem [thread:$0]  (!%p1911_p6), %s2310_s7, 32, %s338_s26, [#allocation15]  }
  0x6e   : > { %s2324_s2 = sld [smem:[#allocation25_spill]] }
  0x74   : > { %s1574_s28 = scalar_lea.hbm %s2324_s2, 16 }
  0x75   : > { %p1575_p13 = scmp.ne.s32.totalorder %s2324_s2, %s1574_s28  ;;  %p1581_p3 = scmp.lt.u32.totalorder %s1574_s28, %s2324_s2 }
  0x77   : > { %p1577_p0 = pnand %p1575_p13, %p1925_p8 }
  0x79   : > { %p1578_p1 = pneg %p1577_p0 }
  0x7b   : > { %p1583_p2 = pnand %p1581_p3, %p1578_p1 }
  0x7d   : > { %1586 = shalt.err (!%p1583_p2)
}
  0x7e   : > { %s1587_s23 = scalar_lea.vmem %s279_s29, 16  ;;  %s1594_s26 = scalar_lea.vmem %s279_s29, 32 }
  0x7f   : > { %p1588_p5 = scmp.ne.s32.totalorder %s279_s29, %s1587_s23  ;;  %p1595_p10 = scmp.lt.s32.totalorder %s279_s29, %s279_s29 }
  0x80   : > { %p1596_p11 = scmp.lt.s32.totalorder %s1594_s26, %s1587_s23 }
  0x81   : > { %p1590_p7 = pnand %p1588_p5, %p1925_p8 }
  0x82   : > { %p1597_p12 = por %p1596_p11, %p1595_p10 }
  0x83   : > { %p1591_p9 = pneg %p1590_p7 }
  0x85   : > { %p1598_p4 = pnand %p1597_p12, %p1591_p9 }
  0x87   : > { %1601 = shalt.err (!%p1598_p4)
}
  0x88   : > { %1335 = dma.hbm_to_vmem [thread:$0]  (!%p1911_p6), %s2324_s2, 16, %s279_s29, [#allocation6]  }
  0x89   : > { %s1807_s24 = smov [#allocation10]   ;;  %s1808_s25 = smov [#allocation13]  }
  0x8a   : > { %s302_s20 = sshll.u32 %s1807_s24, 4  ;;  %s323_s28 = sshll.u32 %s1808_s25, 4  ;;  %s303_s20 = int_to_ptr.vmem [resolvable:$true] %s302_s20  ;;  %s324_s28 = int_to_ptr.vmem [resolvable:$true] %s323_s28 }
  0x8b   : > { %s1602_s18 = scalar_lea.hbm %s2307_s4, 16 }
  0x8c   : > { %p1603_p13 = scmp.ne.s32.totalorder %s2307_s4, %s1602_s18  ;;  %p1609_p3 = scmp.lt.u32.totalorder %s1602_s18, %s2307_s4 }
  0x8e   : > { %p1605_p0 = pnand %p1603_p13, %p1925_p8 }
  0x90   : > { %p1606_p1 = pneg %p1605_p0 }
  0x92   : > { %p1611_p2 = pnand %p1609_p3, %p1606_p1 }
  0x94   : > { %1614 = shalt.err (!%p1611_p2)
}
  0x95   : > { %s1615_s29 = scalar_lea.vmem %s303_s20, 16  ;;  %s1622_s17 = scalar_lea.vmem %s303_s20, 32 }
  0x96   : > { %p1616_p5 = scmp.ne.s32.totalorder %s303_s20, %s1615_s29  ;;  %p1623_p10 = scmp.lt.s32.totalorder %s303_s20, %s303_s20 }
  0x97   : > { %p1624_p11 = scmp.lt.s32.totalorder %s1622_s17, %s1615_s29 }
  0x98   : > { %p1618_p7 = pnand %p1616_p5, %p1925_p8 }
  0x99   : > { %p1625_p12 = por %p1624_p11, %p1623_p10 }
  0x9a   : > { %p1619_p9 = pneg %p1618_p7 }
  0x9c   : > { %p1626_p4 = pnand %p1625_p12, %p1619_p9 }
  0x9e   : > { %1629 = shalt.err (!%p1626_p4)
}
  0x9f   : > { %1341 = dma.hbm_to_vmem [thread:$0]  (!%p1911_p6), %s2307_s4, 16, %s303_s20, [#allocation9]  }
  0xa0   : > { %s1630_s18 = scalar_lea.hbm %s2309_s6, 256 }
  0xa1   : > { %p1631_p13 = scmp.ne.s32.totalorder %s2309_s6, %s1630_s18  ;;  %p1637_p3 = scmp.lt.u32.totalorder %s1630_s18, %s2309_s6 }
  0xa3   : > { %p1633_p0 = pnand %p1631_p13, %p1925_p8 }
  0xa5   : > { %p1634_p1 = pneg %p1633_p0 }
  0xa7   : > { %p1639_p2 = pnand %p1637_p3, %p1634_p1 }
  0xa9   : > { %1642 = shalt.err (!%p1639_p2)
}
  0xaa   : > { %s1643_s29 = scalar_lea.vmem %s324_s28, 256  ;;  %p1651_p10 = scmp.lt.s32.totalorder %s324_s28, %s324_s28 }
  0xab   : > { %p1644_p5 = scmp.ne.s32.totalorder %s324_s28, %s1643_s29  ;;  %p1652_p11 = scmp.lt.s32.totalorder %s1643_s29, %s1643_s29 }
  0xad   : > { %p1646_p7 = pnand %p1644_p5, %p1925_p8  ;;  %p1653_p12 = por %p1652_p11, %p1651_p10 }
  0xaf   : > { %p1647_p9 = pneg %p1646_p7 }
  0xb1   : > { %p1654_p4 = pnand %p1653_p12, %p1647_p9 }
  0xb3   : > { %1657 = shalt.err (!%p1654_p4)
}
  0xb4   : > { %s2325_s20 = smov 4   ;;  %s2326_s17 = smov 64  }
  0xb5   : > { %1347 = dma.hbm_to_vmem [thread:$0]  (!%p1911_p6), %s2309_s6, 256, %s324_s28, [#allocation12], %s2326_s17, %s2326_s17, %s2325_s20  }
  0xb6   : > { %s1809_s13 = smov [#allocation16]   ;;  %s1658_s23 = scalar_lea.hbm %s2311_s8, 16 }
  0xb7   : > { %s348_s14 = sshll.u32 %s1809_s13, 4  ;;  %p1659_p13 = scmp.ne.s32.totalorder %s2311_s8, %s1658_s23  ;;  %s349_s14 = int_to_ptr.vmem [resolvable:$true] %s348_s14 }
  0xb8   : > { %p1665_p3 = scmp.lt.u32.totalorder %s1658_s23, %s2311_s8 }
  0xb9   : > { %p1661_p0 = pnand %p1659_p13, %p1925_p8 }
  0xbb   : > { %p1662_p1 = pneg %p1661_p0 }
  0xbd   : > { %p1667_p2 = pnand %p1665_p3, %p1662_p1 }
  0xbf   : > { %1670 = shalt.err (!%p1667_p2)
}
  0xc0   : > { %s1671_s28 = scalar_lea.vmem %s349_s14, 16  ;;  %s1678_s20 = scalar_lea.vmem %s349_s14, 32 }
  0xc1   : > { %p1672_p5 = scmp.ne.s32.totalorder %s349_s14, %s1671_s28  ;;  %p1679_p10 = scmp.lt.s32.totalorder %s349_s14, %s349_s14 }
  0xc2   : > { %p1680_p11 = scmp.lt.s32.totalorder %s1678_s20, %s1671_s28 }
  0xc3   : > { %p1674_p7 = pnand %p1672_p5, %p1925_p8 }
  0xc4   : > { %p1681_p12 = por %p1680_p11, %p1679_p10 }
  0xc5   : > { %p1675_p9 = pneg %p1674_p7 }
  0xc7   : > { %p1682_p4 = pnand %p1681_p12, %p1675_p9 }
  0xc9   : > { %1685 = shalt.err (!%p1682_p4)
}
  0xca   : > { %1353 = dma.hbm_to_vmem [thread:$0]  (!%p1911_p6), %s2311_s8, 16, %s349_s14, [#allocation15]  }
  0xcb   : > { %s1182_s1 = sadd.s32 4294967294, %s1798_s12   ;;  %s2092_s19 = sadd.s32 1, %s1798_s12  }
  0xcc   : > { %s33_s27 = ssub.s32 %s1798_s12, %s2092_s19  ;;  %s36_s25 = sadd.s32 1, %s1794_s11 }
  0xcd   : > { %p34_p8 = scmp.eq.s32.totalorder %s33_s27, 0  ;;  %p43_p13 = scmp.ne.s32.totalorder %s1794_s11, %s1790_s10 }
  0xce   : > { %p44_p0 = scmp.eq.s32.totalorder %s1798_s12, 0  ;;  %p49_p1 = scmp.ne.s32.totalorder %s1790_s10, %s1786_s30 }
  0xcf   : > { %s2103_s13 = scalar_select %p34_p8, %s1794_s11, %s36_s25  }
  0xd0   : > { %p2105_p3 = por %p44_p0, %p43_p13  ;;  %p2328_p2 = scmp.eq.s32.totalorder %s1893_s15, 0 }
  0xd1   : > { %p241_p5 = scmp.eq.s32.totalorder %s1893_s15, 1  ;;  %p247_p7 = scmp.eq.s32.totalorder %s1182_s1, 1 }
  0xd2   : > { %p2111_p6 = por %p2328_p2, %p49_p1  ;;  %p1370_p9 = scmp.lt.s32.totalorder %s1798_s12, 2 }
  0xd3   : > { %s359_s22 = sand.u32 1, %s1794_s11   ;;  %p2118_p10 = por %p241_p5, %p43_p13 }
  0xd4   : > { %p2122_p11 = por %p247_p7, %p49_p1  ;;  %s1193_s21 = sshll.u32 %s359_s22, 3 }
  0xd5   : > { %s2330_s23 = scalar_select %p2118_p10, 1, 0 }
  0xd6   : > { %s2331_s26 = scalar_select %p2122_p11, 1, 0 }
  0xd7   : > { %s1194_s29 = sshll.u32 %s1798_s12, 7  ;;  %s363_s24 = scalar_lea.vmem [#allocation2], %s1193_s21 }
  0xd8   : > { %s2130_s17 = scalar_lea.hbm %s2303_s0, %s1194_s29  ;;  %s370_s1 = sshll.u32 %s363_s24, 4  ;;  %s2132_s1 = int_to_ptr.vmem [resolvable:$true] %s370_s1 }
  0xd9   : > { %p2136_p12 = pnand %p1370_p9, %p2105_p3  ;;  %s360_s25 = scalar_lea.sflag [#allocation3], %s359_s22 }
  0xda   : > { %s1686_s2 = scalar_lea.hbm %s2130_s17, 128  ;;  %s1691_s28 = scalar_lea.hbm %s2303_s0, 256 }
  0xdb   : > { %p1687_p4 = scmp.ne.s32.totalorder %s2130_s17, %s1686_s2  ;;  %p1688_p8 = pneg %p2136_p12 }
  0xdc   : > { %p1692_p1 = scmp.lt.u32.totalorder %s2130_s17, %s2303_s0  ;;  %p1693_p3 = scmp.lt.u32.totalorder %s1691_s28, %s1686_s2 }
  0xdd   : > { %p1689_p13 = pnand %p1688_p8, %p1687_p4  ;;  %p1695_p5 = scmp.lt.u32.totalorder %s1686_s2, %s2130_s17 }
  0xde   : > { %p1694_p2 = por %p1693_p3, %p1692_p1 }
  0xdf   : > { %p1690_p0 = pneg %p1689_p13 }
  0xe0   : > { %p1696_p7 = por %p1695_p5, %p1694_p2 }
  0xe2   : > { %p1697_p9 = pnand %p1696_p7, %p1690_p0 }
  0xe4   : > { %1700 = shalt.err (!%p1697_p9)
}
  0xe5   : > { %s1701_s22 = scalar_lea.vmem %s2132_s1, 128  ;;  %s1810_s24 = smov [#allocation2]  }
  0xe6   : > { %p1702_p4 = scmp.ne.s32.totalorder %s2132_s1, %s1701_s22  ;;  %s1706_s21 = sshll.u32 %s1810_s24, 4  ;;  %s1707_s21 = int_to_ptr.vmem [resolvable:$false] %s1706_s21 }
  0xe7   : > { %s1708_s29 = scalar_lea.vmem %s1707_s21, 256  ;;  %p1709_p10 = scmp.lt.s32.totalorder %s2132_s1, %s1707_s21 }
  0xe8   : > { %p1704_p13 = pnand %p1702_p4, %p1688_p8  ;;  %p1710_p1 = scmp.lt.s32.totalorder %s1708_s29, %s1701_s22 }
  0xea   : > { %p1705_p11 = pneg %p1704_p13  ;;  %p1711_p3 = por %p1710_p1, %p1709_p10 }
  0xec   : > { %p1712_p2 = pnand %p1711_p3, %p1705_p11 }
  0xee   : > { %1715 = shalt.err (!%p1712_p2)
}
  0xef   : > { %1357 = dma.hbm_to_vmem [thread:$0]  (!%p2136_p12), %s2130_s17, 128, %s2132_s1, %s360_s25  }
  0xf0   : > { %p2333_p0 = scmp.ne.s32.totalorder %s2320_s16, 0 }
  0xf1   : > { %s2168_s2 = sand.u32 (!%p2333_p0), 1, %s1790_s10  }
  0xf2   : > { %379 = sbr.rel (%p2333_p0) target bundleno = 2362 (0x93a), region = 56  ;;  %s1196_s28 = sshll.u32 (!%p2333_p0), %s2168_s2, 3 }
  0xf3   : > { %s382_s18 = scalar_lea.sflag (!%p2333_p0), [#allocation3], %s2168_s2  ;;  %s385_s20 = scalar_lea.vmem (!%p2333_p0), [#allocation2], %s1196_s28 }
  0xf9   : > { %1761 = dma.done.wait (%p2111_p6), %s382_s18, 128  }
  0xfa   : > { %1763 = vsyncadd (%p2111_p6), %s382_s18, 4294967168  ;;  %p2334_p10 = scmp.eq.s32.totalorder %s1893_s15, 0 }
  0xfc   : > { %1765 = dma.done.wait (%p2334_p10), [#allocation6], 32   ;;  %p2335_p11 = pmov %p2334_p10 }
  0xfd   : > { %p2336_p12 = pmov %p2334_p10 }
  0xfe   : > { %1767 = vsyncadd (%p2335_p11), [#allocation6], 4294967264 }
  0xff   : > { %1769 = dma.done.wait (%p2336_p12), [#allocation9], 272   ;;  %p2337_p8 = pmov %p2334_p10 }
 0x101   : > { %1771 = vsyncadd (%p2337_p8), [#allocation9], 4294967024  ;;  %p2338_p5 = pmov %p2337_p8 }
 0x103   : > { %1773 = dma.done.wait (%p2338_p5), [#allocation12], 272   ;;  %p2339_p7 = pmov %p2338_p5 }
 0x104   : > { %p2340_p6 = pmov %p2338_p5 }
 0x105   : > { %1775 = vsyncadd (%p2339_p7), [#allocation12], 4294967024 }
 0x106   : > { %1777 = dma.done.wait (%p2340_p6), [#allocation15], 48   ;;  %p2341_p9 = pmov %p2338_p5 }
 0x107   : > { %vm456_vm0 = vcmask 258048   ;;  %v2194_v0 = vld [vmem:[%s385_s20] sm:$0x1f]  ;;  %v1434_v7 = vld [vmem:[#allocation8] sm:$0xff]   ;;  %v1811_v8 = vmov 0.0   ;;  %vm1812_vm1 = vmmov 0  }
 0x108   : > { %1779 = vsyncadd (%p2341_p9), [#allocation15], 4294967248  ;;  %v457_v1 = vsel %vm456_vm0, %v2194_v0, 0.0  ;;  %1242 = vmatprep.subr.bf16.mxu0 %v1811_v8  ;;  %1250 = vmatprep.subr.bf16.mxu1 %v1811_v8  ;;  %v1435_v9 = vld [vmem:[#allocation8 + $0x8] sm:$0xff]   ;;  %v1206_v14 = vld [vmem:[#allocation5] ss:$0 sm:$0xff] }
 0x109   : > { %458 = vadd.xlane.f32.xlu0 %v457_v1  ;;  %1243 = vmatpush3.bf16.msra.mxu0 %v1434_v7  ;;  %v1207_v16 = vld [vmem:[#allocation7] ss:$0 sm:$0xff]  ;;  %vm522_vm2 = vcmask 261120   ;;  %v1208_v29 = vld [vmem:[#allocation10] ss:$0 sm:$0xff]  ;;  %s1813_s16 = smov 80  }
 0x10a   : > { %1246 = vmatprep.mubr.msk.bf16.mxu0 %vm1812_vm1, %v1811_v8  ;;  %1244 = vmatprep.subr.bf16.mxu0 %v1811_v8  ;;  %v1212_v32 = vld [vmem:[#allocation11] ss:$0 sm:$0xff]  ;;  %s1814_s14 = smov 96   ;;  %s1815_s17 = smov 112   ;;  %vm578_vm5 = vcmask 130048   ;;  %vm626_vm6 = vcmask 36864  }
 0x10b   : > { %1252 = vmatprep.mubr.msk.bf16.mxu1 %vm1812_vm1, %v1811_v8  ;;  %s1816_s1 = smov 48   ;;  %s1817_s27 = smov 64   ;;  %vm643_vm7 = vcmask 126976   ;;  %vm666_vm9 = vcmask 1041408   ;;  %vm667_vm13 = vcmask 1042432   ;;  %vm662_vm14 = vcmask 39936  }
 0x10c   : > { %s1820_s25 = smov 16   ;;  %vm976_vm15 = vcmask 1040384   ;;  %s1223_s22 = sshll.u32 %s1893_s15, 7 }
 0x10d   : > { %1245 = vmatpush3.bf16.msra.mxu0 %v1435_v9  ;;  %s451_s24 = scalar_lea.vmem [#allocation17], %s1196_s28  ;;  %s2258_s20 = scalar_lea.hbm %s2312_s9, %s1223_s22 }
 0x10e   : > { %1256 = vmatprep.subr.bf16.mxu0 %v1811_v8  ;;  %s1036_s21 = sshll.u32 %s451_s24, 4  ;;  %s1023_s15 = scalar_lea.sflag [#allocation4], %s2168_s2  ;;  %s2260_s21 = int_to_ptr.vmem [resolvable:$true] %s1036_s21 }
 0x10f   : > { %s1716_s28 = scalar_lea.vmem %s2260_s21, 128  ;;  %p2342_p13 = scmp.ne.s32.totalorder %s2330_s23, 0 }
 0x110   : > { %p1717_p4 = scmp.ne.s32.totalorder %s2260_s21, %s1716_s28 }
 0x112   : > { %p1718_p1 = pnand %p1717_p4, %p2342_p13 }
 0x114   : > { %p1719_p3 = pneg %p1718_p1 }
 0x196   : > { %v459_v2 = vpop.xlane.xlu0 %458 }
 0x197   : > { %v461_v3 = vmul.f32 0.03125, %v459_v2 }
 0x199   : > { %v462_v4 = vsub.f32 %v2194_v0, %v461_v3 }
 0x19b   : > { %v463_v5 = vmul.f32 %v462_v4, %v462_v4 }
 0x19d   : > { %v464_v6 = vsel %vm456_vm0, %v463_v5, 0.0 }
 0x19e   : > { %465 = vadd.xlane.f32.xlu0 %v464_v6 }
 0x22b   : > { %v466_v10 = vpop.xlane.xlu0 %465 }
 0x22c   : > { %v467_v11 = vmul.f32 0.03125, %v466_v10 }
 0x22e   : > { %v468_v12 = vadd.f32 1e-05, %v467_v11 }
 0x230   : > { %1438 = vrsqrt.f32 %v468_v12 }
 0x23a   : > { %v1439_v13 = vpop.eup %1438 }
 0x23b   : > { %v470_v15 = vmul.f32 %v1439_v13, %v462_v4 }
 0x23d   : > { %v477_v17 = vmul.f32 %v1206_v14, %v470_v15 }
 0x23f   : > { %v484_v18 = vadd.f32 %v1207_v16, %v477_v17 }
 0x241   : > { %v497_v19 = vpack.c.bf16 %v484_v18, %v484_v18  ;;  %v485_v20 = vmul.f32 %v484_v18, %v484_v18 }
 0x243   : > { %1247 = vmatmul.mubr.msk.bf16.vlgmr.msra.gmra.mrb[0].mxu0 %vm522_vm2, %v497_v19  ;;  %v486_v21 = vsel %vm456_vm0, %v485_v20, 0.0 }
 0x244   : > { %487 = vadd.xlane.f32.xlu1 %v486_v21  ;;  %1258 = vmatprep.mubr.msk.bf16.mxu0 %vm1812_vm1, %v1811_v8 }
 0x2d1   : > { %v488_v22 = vpop.xlane.xlu1 %487 }
 0x2d2   : > { %v489_v23 = vadd.f32 1.0, %v488_v22 }
 0x2d4   : > { %1440 = vrsqrt.f32 %v489_v23  ;;  %vm492_vm3 = vcmp.eq.f32.partialorder %v489_v23, inf  ;;  %v495_v27 = vand.u32 2147483648, %v489_v23  ;;  %vm494_vm4 = vcmp.eq.f32.partialorder %v489_v23, 0.0 }
 0x2de   : > { %v1441_v24 = vpop.eup %1440 }
 0x2df   : > { %v491_v25 = vmul.f32 %v1441_v24, %v489_v23 }
 0x2e1   : > { %v493_v26 = vsel %vm492_vm3, %v489_v23, %v491_v25  ;;  %v1818_v25 = vmov 65535  }
 0x2e2   : > { %v496_v28 = vsel %vm494_vm4, %v495_v27, %v493_v26  ;;  %v668_v26 = vsel %vm666_vm9, 4294967295, %v1818_v25 }
 0x2e3   : > { %v509_v30 = vmul.f32 %v1208_v29, %v496_v28 }
 0x316   : > { %v560_v31 = vpop.f32.mrb[0].mxu0 }
 0x317   : > { %v561_v33 = vadd.f32 %v560_v31, %v509_v30  ;;  %v1248_v34 = vpop.f32.mrb[1].mxu0 }
 0x318   : > { %v563_v35 = vpop.f32.mrb[2].mxu0  ;;  %v669_v34 = vsel %vm667_vm13, %v668_v26, 0 }
 0x319   : > { %v2212_v36 = vadd.f32 %v1212_v32, %v561_v33  ;;  %v1249_v37 = vpop.f32.mrb[3].mxu0 }
 0x31b   : > { %v574_v38 = vpack.c.bf16 %v2212_v36, %v2212_v36  ;;  %v638_v56 = vmul.f32 %v2212_v36, %v2212_v36 }
 0x31d   : > { %741 = vrot.lane.b32.xlu0 %v574_v38, %s1813_s16  ;;  %576 = vrot.lane.b32.xlu1 %v574_v38, %s1814_s14  ;;  %s1821_s16 = smov [#allocation17]  }
 0x31e   : > { %s1720_s14 = sshll.u32 %s1821_s16, 4  ;;  %s1721_s14 = int_to_ptr.vmem [resolvable:$false] %s1720_s14 }
 0x31f   : > { %p1723_p2 = scmp.lt.s32.totalorder %s2260_s21, %s1721_s14 }
 0x321   : > { %739 = vrot.lane.b32.xlu1 %v574_v38, %s1815_s17  ;;  %s1722_s17 = scalar_lea.vmem %s1721_s14, 256 }
 0x322   : > { %p1724_p0 = scmp.lt.s32.totalorder %s1722_s17, %s1716_s28 }
 0x324   : > { %p1725_p10 = por %p1724_p0, %p1723_p2 }
 0x326   : > { %p1726_p11 = pnand %p1725_p10, %p1719_p3 }
 0x38f   : > { %v577_v39 = vpop.permute.xlu1 %576  ;;  %v742_v41 = vpop.permute.xlu0 %741 }
 0x390   : > { %v583_v40 = vsel %vm578_vm5, %v577_v39, 0  ;;  %v747_v42 = vsel %vm578_vm5, %v742_v41, 0 }
 0x391   : > { %1251 = vmatpush3.bf16.xpose.msra.mxu1 %v583_v40 }
 0x392   : > { %1262 = vmatprep.subr.bf16.mxu1 %v1811_v8 }
 0x393   : > { %v740_v43 = vpop.permute.xlu1 %739 }
 0x398   : > { %1253 = vmatmul.mubr.msk.bf16.vlgmr.msra.gmra.mrb[0].mxu1 %vm578_vm5, %v574_v38 }
 0x399   : > { %1263 = vmatpush3.bf16.xpose.msra.mxu1 %v747_v42  ;;  %1264 = vmatprep.mubr.msk.bf16.mxu1 %vm1812_vm1, %v1811_v8 }
 0x39a   : > { %1274 = vmatprep.subr.bf16.mxu1 %v1811_v8 }
 0x3a0   : > { %1265 = vmatmul.mubr.msk.bf16.vlgmr.msra.gmra.mrb[4].mxu1 %vm578_vm5, %v740_v43 }
 0x3a1   : > { %1278 = vmatprep.mubr.msk.bf16.mxu1 %vm1812_vm1, %v1811_v8 }
 0x46b   : > { %v619_v44 = vpop.f32.mrb[0].mxu1 }
 0x46c   : > { %v625_v45 = vmul.f32 0.25, %v619_v44  ;;  %v1254_v46 = vpop.f32.mrb[1].mxu1 }
 0x46d   : > { %v622_v47 = vpop.f32.mrb[2].mxu1 }
 0x46e   : > { %v1255_v48 = vpop.f32.mrb[3].mxu1  ;;  %v627_v49 = vsel %vm626_vm6, %v625_v45, -inf }
 0x46f   : > { %628 = vmax.xlane.f32.xlu1 %v627_v49 }
 0x473   : > { %v783_v50 = vpop.f32.mrb[4].mxu1 }
 0x474   : > { %v789_v51 = vmul.f32 0.25, %v783_v50  ;;  %v1266_v52 = vpop.f32.mrb[5].mxu1 }
 0x475   : > { %v786_v53 = vpop.f32.mrb[6].mxu1 }
 0x476   : > { %v1267_v54 = vpop.f32.mrb[7].mxu1  ;;  %v790_v55 = vsel %vm626_vm6, %v789_v51, -inf }
 0x477   : > { %791 = vmax.xlane.f32.xlu0 %v790_v55  ;;  %v1819_v54 = vmov 16  }
 0x478   : > { %1432 = vset.pattern.permute.xlu0 %v1819_v54  ;;  %1433 = vset.pattern.permute.xlu1 %v1819_v54 }
 0x480   : > { %801 = vrot.lane.b32.xlu1 %v638_v56, %s1816_s1 }
 0x48d   : > { %640 = vrot.lane.b32.xlu0 %v638_v56, %s1817_s27 }
 0x4fc   : > { %v629_v57 = vpop.xlane.xlu1 %628 }
 0x4fd   : > { %v630_v58 = vsub.f32 %v625_v45, %v629_v57 }
 0x4ff   : > { %v631_v59 = vmul.f32 1.442695, %v630_v58 }
 0x500   : > { %v802_v60 = vpop.permute.xlu1 %801 }
 0x501   : > { %1442 = vpow2.f32 %v631_v59  ;;  %v804_v61 = vsel %vm643_vm7, %v802_v60, 0.0 }
 0x502   : > { %805 = vadd.xlane.f32.xlu0 %v804_v61 }
 0x504   : > { %v792_v62 = vpop.xlane.xlu0 %791 }
 0x505   : > { %v793_v63 = vsub.f32 %v789_v51, %v792_v62 }
 0x507   : > { %v794_v1 = vmul.f32 1.442695, %v793_v63 }
 0x508   : > { %v641_v2 = vpop.permute.xlu0 %640 }
 0x509   : > { %1444 = vpow2.f32 %v794_v1  ;;  %v644_v3 = vsel %vm643_vm7, %v641_v2, 0.0 }
 0x50a   : > { %645 = vadd.xlane.f32.xlu1 %v644_v3 }
 0x50b   : > { %v1443_v4 = vpop.eup %1442 }
 0x50c   : > { %v633_v5 = vsel %vm626_vm6, %v1443_v4, 0.0 }
 0x50d   : > { %634 = vadd.xlane.f32.xlu0 %v633_v5 }
 0x513   : > { %v1445_v6 = vpop.eup %1444 }
 0x514   : > { %v796_v7 = vsel %vm626_vm6, %v1445_v6, 0.0 }
 0x515   : > { %797 = vadd.xlane.f32.xlu1 %v796_v7 }
 0x523   : > { %656 = vrot.lane.b32.xlu0 %v2212_v36, %s1817_s27 }
 0x526   : > { %815 = vrot.lane.b32.xlu1 %v2212_v36, %s1816_s1 }
 0x58f   : > { %v806_v9 = vpop.xlane.xlu0 %805 }
 0x590   : > { %v807_v10 = vadd.f32 1.0, %v806_v9 }
 0x592   : > { %1446 = vrsqrt.f32 %v807_v10  ;;  %vm810_vm8 = vcmp.eq.f32.partialorder %v807_v10, inf  ;;  %v813_v21 = vand.u32 2147483648, %v807_v10  ;;  %vm812_vm12 = vcmp.eq.f32.partialorder %v807_v10, 0.0 }
 0x597   : > { %v646_v11 = vpop.xlane.xlu1 %645 }
 0x598   : > { %v647_v12 = vadd.f32 1.0, %v646_v11  ;;  %v1436_v11 = vld [vmem:[#allocation13] sm:$0xff]  }
 0x599   : > { %1275 = vmatpush3.bf16.msra.mxu1 %v1436_v11 }
 0x59a   : > { %1448 = vrsqrt.f32 %v647_v12  ;;  %v635_v13 = vpop.xlane.xlu0 %634  ;;  %vm650_vm10 = vcmp.eq.f32.partialorder %v647_v12, inf  ;;  %v653_v20 = vand.u32 2147483648, %v647_v12  ;;  %vm652_vm11 = vcmp.eq.f32.partialorder %v647_v12, 0.0  ;;  %1276 = vmatprep.subr.bf16.mxu1 %v1811_v8 }
 0x59b   : > { %1450 = vrcp.f32 %v635_v13  ;;  %v970_v13 = vld [vmem:[#allocation14] sm:$0x3] }
 0x59c   : > { %v1447_v14 = vpop.eup %1446 }
 0x59d   : > { %v809_v15 = vmul.f32 %v1447_v14, %v807_v10 }
 0x59e   : > { %v657_v27 = vpop.permute.xlu0 %656 }
 0x59f   : > { %v811_v19 = vsel %vm810_vm8, %v807_v10, %v809_v15 }
 0x5a0   : > { %v814_v29 = vsel %vm812_vm12, %v813_v21, %v811_v19 }
 0x5a2   : > { %v798_v16 = vpop.xlane.xlu1 %797 }
 0x5a3   : > { %1452 = vrcp.f32 %v798_v16  ;;  %v971_v16 = vpack.c.bf16 %v970_v13, %v970_v13 }
 0x5a4   : > { %v1449_v17 = vpop.eup %1448 }
 0x5a5   : > { %v649_v18 = vmul.f32 %v1449_v17, %v647_v12  ;;  %v1451_v24 = vpop.eup %1450 }
 0x5a6   : > { %v816_v22 = vpop.permute.xlu1 %815  ;;  %v637_v33 = vmul.f32 %v1451_v24, %v1443_v4 }
 0x5a7   : > { %v651_v23 = vsel %vm650_vm10, %v647_v12, %v649_v18  ;;  %v818_v31 = vsel %vm578_vm5, %v816_v22, %v814_v29  ;;  %v1437_v12 = vld [vmem:[#allocation13 + $0x8] sm:$0xff]  }
 0x5a8   : > { %v654_v28 = vsel %vm652_vm11, %v653_v20, %v651_v23  ;;  %v819_v36 = vpack.c.bf16 %v818_v31, %v818_v31  ;;  %v661_v37 = vpack.c.bf16 %v637_v33, %v637_v33  ;;  %1277 = vmatpush3.bf16.msra.mxu1 %v1437_v12  ;;  %v978_v20 = vsel %vm976_vm15, %v971_v16, 0 }
 0x5a9   : > { %v659_v30 = vsel %vm578_vm5, %v657_v27, %v654_v28  ;;  %1282 = vmatprep.subr.bf16.mxu1 %v1811_v8 }
 0x5aa   : > { %v660_v32 = vpack.c.bf16 %v659_v30, %v659_v30  ;;  %v825_v39 = vand.u32 %v819_v36, %v669_v34 }
 0x5ac   : > { %v671_v35 = vand.u32 %v669_v34, %v660_v32  ;;  %v1217_v34 = vld [vmem:[#allocation16] ss:$0 sm:$0xff] }
 0x5ad   : > { %v1453_v38 = vpop.eup %1452 }
 0x5ae   : > { %1257 = vmatpush3.bf16.msra.mxu0 %v671_v35  ;;  %v800_v40 = vmul.f32 %v1453_v38, %v1445_v6  ;;  %v907_v35 = vadd.f32 %v1217_v34, %v2194_v0 }
 0x5af   : > { %1268 = vmatprep.subr.bf16.mxu0 %v1811_v8 }
 0x5b0   : > { %v820_v41 = vpack.c.bf16 %v800_v40, %v800_v40 }
 0x5b1   : > { %1259 = vmatmul.mubr.msk.bf16.vlgmr.msra.gmra.mrb[4].mxu0 %vm662_vm14, %v661_v37 }
 0x5b2   : > { %1269 = vmatpush3.bf16.msra.mxu0 %v825_v39  ;;  %1270 = vmatprep.mubr.msk.bf16.mxu0 %vm1812_vm1, %v1811_v8 }
 0x5b9   : > { %1271 = vmatmul.mubr.msk.bf16.vlgmr.msra.gmra.mrb[8].mxu0 %vm662_vm14, %v820_v41 }
 0x684   : > { %v707_v42 = vpop.f32.mrb[4].mxu0 }
 0x685   : > { %v713_v43 = vmul.f32 %v707_v42, %v707_v42  ;;  %v1260_v44 = vpop.f32.mrb[5].mxu0 }
 0x686   : > { %v710_v45 = vpop.f32.mrb[6].mxu0 }
 0x687   : > { %v1261_v46 = vpop.f32.mrb[7].mxu0  ;;  %v714_v47 = vsel %vm643_vm7, %v713_v43, 0.0 }
 0x688   : > { %715 = vadd.xlane.f32.xlu1 %v714_v47 }
 0x68c   : > { %v861_v48 = vpop.f32.mrb[8].mxu0 }
 0x68d   : > { %v867_v49 = vmul.f32 %v861_v48, %v861_v48  ;;  %v1272_v50 = vpop.f32.mrb[9].mxu0 }
 0x68e   : > { %v864_v51 = vpop.f32.mrb[10].mxu0 }
 0x68f   : > { %v1273_v52 = vpop.f32.mrb[11].mxu0  ;;  %v868_v53 = vsel %vm643_vm7, %v867_v49, 0.0 }
 0x690   : > { %869 = vadd.xlane.f32.xlu0 %v868_v53 }
 0x715   : > { %v716_v55 = vpop.xlane.xlu1 %715 }
 0x716   : > { %v717_v56 = vsub.f32 %v716_v55, %v713_v43 }
 0x718   : > { %v718_v57 = vsub.f32 0.0, %v717_v56 }
 0x71a   : > { %v719_v58 = vmax.f32 %v718_v57, 1e-06 }
 0x71c   : > { %1454 = vrsqrt.f32 %v719_v58 }
 0x71d   : > { %v870_v59 = vpop.xlane.xlu0 %869 }
 0x71e   : > { %v871_v60 = vsub.f32 %v870_v59, %v867_v49 }
 0x720   : > { %v872_v61 = vsub.f32 0.0, %v871_v60 }
 0x722   : > { %v873_v62 = vmax.f32 %v872_v61, 1e-06 }
 0x724   : > { %1456 = vrsqrt.f32 %v873_v62 }
 0x726   : > { %v1455_v63 = vpop.eup %1454 }
 0x727   : > { %723 = vperm.xlu0 %1432, %v1455_v63  }
 0x72e   : > { %v1457_v1 = vpop.eup %1456 }
 0x72f   : > { %877 = vperm.xlu1 %1433, %v1457_v1  }
 0x7a6   : > { %v724_v2 = vpop.permute.xlu0 %723 }
 0x7a7   : > { %v726_v3 = vmul.f32 %v724_v2, %v707_v42 }
 0x7a9   : > { %v727_v4 = vmul.f32 %v726_v3, %v726_v3 }
 0x7ab   : > { %v728_v5 = vsel %vm643_vm7, %v727_v4, 0.0 }
 0x7ac   : > { %729 = vadd.xlane.f32.xlu1 %v728_v5 }
 0x7ae   : > { %v878_v6 = vpop.permute.xlu1 %877 }
 0x7af   : > { %v880_v7 = vmul.f32 %v878_v6, %v861_v48 }
 0x7b1   : > { %v881_v9 = vmul.f32 %v880_v7, %v880_v7 }
 0x7b3   : > { %v882_v10 = vsel %vm643_vm7, %v881_v9, 0.0 }
 0x7b4   : > { %883 = vadd.xlane.f32.xlu0 %v882_v10 }
 0x7bd   : > { %894 = vrot.lane.b32.xlu1 %v880_v7, %s1820_s25 }
 0x839   : > { %v730_v14 = vpop.xlane.xlu1 %729 }
 0x83a   : > { %v731_v15 = vadd.f32 1.0, %v730_v14 }
 0x83c   : > { %1458 = vrsqrt.f32 %v731_v15  ;;  %vm734_vm3 = vcmp.eq.f32.partialorder %v731_v15, inf  ;;  %v737_v28 = vand.u32 2147483648, %v731_v15  ;;  %vm736_vm6 = vcmp.eq.f32.partialorder %v731_v15, 0.0 }
 0x83d   : > { %v895_v17 = vpop.permute.xlu1 %894 }
 0x83e   : > { %v897_v18 = vsel %vm578_vm5, %v726_v3, %v895_v17  ;;  %vm898_vm5 = vcmask 7168  }
 0x83f   : > { %v908_v19 = vpack.c.bf16 %v897_v18, %v897_v18 }
 0x841   : > { %v884_v21 = vpop.xlane.xlu0 %883  ;;  %1279 = vmatmul.mubr.msk.bf16.vlgmr.msra.gmra.mrb[8].mxu1 %vm522_vm2, %v908_v19 }
 0x842   : > { %v885_v22 = vadd.f32 1.0, %v884_v21  ;;  %1283 = vmatpush3.bf16.msra.mxu1 %v978_v20  ;;  %1284 = vmatprep.mubr.msk.bf16.mxu1 %vm1812_vm1, %v1811_v8  ;;  %vm972_vm1 = vcmask 15360  }
 0x844   : > { %1460 = vrsqrt.f32 %v885_v22  ;;  %vm888_vm4 = vcmp.eq.f32.partialorder %v885_v22, inf  ;;  %v891_v29 = vand.u32 2147483648, %v885_v22  ;;  %vm890_vm2 = vcmp.eq.f32.partialorder %v885_v22, 0.0 }
 0x846   : > { %v1459_v23 = vpop.eup %1458 }
 0x847   : > { %v733_v24 = vmul.f32 %v1459_v23, %v731_v15 }
 0x849   : > { %v735_v27 = vsel %vm734_vm3, %v731_v15, %v733_v24 }
 0x84a   : > { %v738_v31 = vsel %vm736_vm6, %v737_v28, %v735_v27 }
 0x84e   : > { %v1461_v25 = vpop.eup %1460 }
 0x84f   : > { %v887_v26 = vmul.f32 %v1461_v25, %v885_v22 }
 0x851   : > { %v889_v30 = vsel %vm888_vm4, %v885_v22, %v887_v26 }
 0x852   : > { %v892_v32 = vsel %vm890_vm2, %v891_v29, %v889_v30 }
 0x853   : > { %v899_v33 = vsel %vm898_vm5, %v738_v31, %v892_v32 }
 0x854   : > { %v969_v8 = vpack.c.bf16 %v899_v33, %v899_v33 }
 0x856   : > { %1285 = vmatmul.mubr.msk.bf16.vlgmr.msra.gmra.mrb[8].mxu1 %vm972_vm1, %v969_v8 }
 0x929   : > { %v1014_v36 = vpop.f32.mrb[8].mxu1 }
 0x92a   : > { %v1288_v37 = vadd.f32 %v1014_v36, %v907_v35  ;;  %v1286_v38 = vpop.f32.mrb[9].mxu1 }
 0x92b   : > { %v1017_v39 = vpop.f32.mrb[10].mxu1 }
 0x92c   : > { %v1287_v40 = vpop.f32.mrb[11].mxu1  ;;  %1021 = vst.msk [vmem:[%s451_s24] sm:$0x1f] %vm456_vm0, %v1288_v37 }
 0x92d   : > { %1729 = shalt.err (!%p1726_p11)
}
 0x92e   : > { %s1730_s2 = scalar_lea.hbm %s2258_s20, 128  ;;  %s1734_s25 = scalar_lea.hbm %s2312_s9, 256 }
 0x92f   : > { %p1731_p12 = scmp.ne.s32.totalorder %s2258_s20, %s1730_s2  ;;  %p1735_p7 = scmp.lt.u32.totalorder %s2258_s20, %s2312_s9 }
 0x930   : > { %p1736_p6 = scmp.lt.u32.totalorder %s1734_s25, %s1730_s2  ;;  %p1738_p4 = scmp.lt.u32.totalorder %s1730_s2, %s2258_s20 }
 0x931   : > { %p1732_p8 = pnand %p1731_p12, %p2342_p13 }
 0x932   : > { %p1737_p9 = por %p1736_p6, %p1735_p7 }
 0x933   : > { %p1733_p5 = pneg %p1732_p8 }
 0x934   : > { %p1739_p1 = por %p1738_p4, %p1737_p9 }
 0x936   : > { %p1740_p3 = pnand %p1739_p1, %p1733_p5 }
 0x938   : > { %1743 = shalt.err (!%p1740_p3)
}
 0x939   : > { %1327 = dma.vmem_to_hbm [thread:$0]  (%p2342_p13), %s2260_s21, 128, %s2258_s20, %s1023_s15  }
 0x93a PF: > { %s1048_s29 = sand.u32 1, %s1786_s30   ;;  %p2343_p2 = scmp.ne.s32.totalorder %s2331_s26, 0 }
 0x93b   : > { %p2344_p0 = scmp.ge.s32.totalorder %s1798_s12, 2  ;;  %s1049_s18 = scalar_lea.sflag [#allocation4], %s1048_s29 }
 0x93d   : > { %p1359_p10 = pnand %p2344_p0, %p2343_p2 }
 0x93f   : > { %1781 = dma.done.wait (!%p1359_p10), %s1049_s18, 128  }
 0x940   : > { %1783 = vsyncadd (!%p1359_p10), %s1049_s18, 4294967168  ;;  %p26_p11 = scmp.ge.s32.totalorder %s2092_s19, 4   ;;  %s2345_s30 = smov %s1790_s10 }
 0x941   : > { %s2346_s10 = smov %s1794_s11  ;;  %s2347_s11 = smov %s2103_s13 }
 0x942   : > { %s2348_s12 = smov %s2092_s19  ;;  %28 = sbr.rel (!%p26_p11) target bundleno = 12 (0xc), region = 133 }
 0x949   :  { %1054 = vsyncpa [#allocation3], 1 }
 0x94a   :  { %1056 = vsyncpa [#allocation3 + $0x1], 1 }
 0x94b   :  { %1057 = vsyncpa [#allocation6], 1 }
 0x94c   :  { %1058 = vsyncpa [#allocation9], 1 }
 0x94d   :  { %1059 = vsyncpa [#allocation12], 1 }
 0x94e   :  { %1060 = vsyncpa [#allocation15], 1 }
 0x94f   :  { %1061 = vsyncpa [#allocation4], 1 }
 0x950   :  { %1063 = vsyncpa [#allocation4 + $0x1], 1 }

// kernel: hyp_clip_vision_forward.13
= control target key start
LH: loop header
LB: loop body
LE: loop exit
PB: predicated region body
PF: predicated region fallthrough
CT: control target
= control target key end

     0   :  { %vm18_vm0 = vcmask 254976   ;;  %s159_s0 = inlined_call_operand.vmem [shape: f32[2,32], index: 0, kind: input, shape index: {}]   ;;  %s160_s1 = inlined_call_operand.vmem [shape: f32[1,32], index: 1, kind: input, shape index: {}]   ;;  %s161_s2 = inlined_call_operand.vmem [shape: f32[1,32], index: 2, kind: input, shape index: {}]   ;;  %s162_s3 = inlined_call_operand.hbm [shape: f32[2,33], index: 3, kind: output, shape index: {}]  }
   0x1   :  { %v15_v0 = vld [vmem:[%s159_s0] sm:$0x3] }
   0x2   :  { %8 = vsyncpa [#allocation3], 0  ;;  %v19_v1 = vsel %vm18_vm0, %v15_v0, 0.0  ;;  %v81_v11 = vld [vmem:[%s160_s1] ss:$0 sm:$0xff]  ;;  %s113_s17 = smov 1  }
   0x3   :  { %20 = vadd.xlane.f32.xlu0 %v19_v1  ;;  %v82_v13 = vld [vmem:[%s161_s2] ss:$0 sm:$0xff]  ;;  %s114_s18 = smov [#allocation2]   ;;  %vm63_vm2 = vcmask 7168   ;;  %vm65_vm4 = vcmask 263168  }
   0x4   :  { %s73_s1 = sshll.u32 %s114_s18, 4  ;;  %s74_s1 = int_to_ptr.vmem [resolvable:$true] %s73_s1 }
   0x5   :  { %s89_s2 = scalar_lea.vmem %s74_s1, 32  ;;  %p94_p1 = scmp.lt.s32.totalorder %s74_s1, %s74_s1 }
   0x6   :  { %p90_p0 = scmp.ne.s32.totalorder %s74_s1, %s89_s2  ;;  %p95_p2 = scmp.lt.s32.totalorder %s89_s2, %s89_s2 }
   0x8   :  { %p96_p3 = por %p95_p2, %p94_p1 }
   0xa   :  { %p97_p4 = pnand %p96_p3, %p90_p0 }
  0x90   :  { %v21_v2 = vpop.xlane.xlu0 %20 }
  0x91   :  { %v23_v3 = vmul.f32 0.03125, %v21_v2 }
  0x93   :  { %v24_v4 = vsub.f32 %v15_v0, %v23_v3 }
  0x95   :  { %v25_v5 = vmul.f32 %v24_v4, %v24_v4 }
  0x97   :  { %v26_v6 = vsel %vm18_vm0, %v25_v5, 0.0 }
  0x98   :  { %27 = vadd.xlane.f32.xlu0 %v26_v6 }
 0x125   :  { %v28_v7 = vpop.xlane.xlu0 %27 }
 0x126   :  { %v29_v8 = vmul.f32 0.03125, %v28_v7 }
 0x128   :  { %v30_v9 = vadd.f32 1e-05, %v29_v8 }
 0x12a   :  { %85 = vrsqrt.f32 %v30_v9 }
 0x134   :  { %v86_v10 = vpop.eup %85 }
 0x135   :  { %v32_v12 = vmul.f32 %v86_v10, %v24_v4 }
 0x137   :  { %v39_v14 = vmul.f32 %v81_v11, %v32_v12 }
 0x139   :  { %v46_v15 = vadd.f32 %v82_v13, %v39_v14 }
 0x13b   :  { %v47_v16 = vmul.f32 %v46_v15, %v46_v15 }
 0x13d   :  { %v48_v17 = vsel %vm18_vm0, %v47_v16, 0.0 }
 0x13e   :  { %49 = vadd.xlane.f32.xlu1 %v48_v17 }
 0x14f   :  { %60 = vrot.lane.b32.xlu1 %v46_v15, %s113_s17 }
 0x1cb   :  { %v50_v18 = vpop.xlane.xlu1 %49 }
 0x1cc   :  { %v51_v19 = vadd.f32 1.0, %v50_v18 }
 0x1ce   :  { %87 = vrsqrt.f32 %v51_v19  ;;  %vm54_vm1 = vcmp.eq.f32.partialorder %v51_v19, inf  ;;  %v57_v22 = vand.u32 2147483648, %v51_v19  ;;  %vm56_vm3 = vcmp.eq.f32.partialorder %v51_v19, 0.0 }
 0x1cf   :  { %v61_v25 = vpop.permute.xlu1 %60 }
 0x1d8   :  { %v88_v20 = vpop.eup %87 }
 0x1d9   :  { %v53_v21 = vmul.f32 %v88_v20, %v51_v19 }
 0x1db   :  { %v55_v23 = vsel %vm54_vm1, %v51_v19, %v53_v21 }
 0x1dc   :  { %v58_v24 = vsel %vm56_vm3, %v57_v22, %v55_v23 }
 0x1dd   :  { %v64_v26 = vsel %vm63_vm2, %v58_v24, %v61_v25 }
 0x1de   :  { %66 = vst.msk [vmem:[#allocation2] sm:$0x3] %vm65_vm4, %v64_v26 }
 0x1df   :  { %100 = shalt.err (!%p97_p4)
}
 0x1e0   :  { %s101_s21 = scalar_lea.hbm %s162_s3, 32 }
 0x1e1   :  { %p102_p5 = scmp.ne.s32.totalorder %s162_s3, %s101_s21  ;;  %p105_p6 = scmp.lt.u32.totalorder %s101_s21, %s162_s3 }
 0x1e3   :  { %p107_p7 = pnand %p105_p6, %p102_p5 }
 0x1e5   :  { %110 = shalt.err (!%p107_p7)
}
 0x1e6   :  { %76 = dma.vmem_to_hbm [thread:$0]  %s74_s1, 32, %s162_s3, [#allocation3]  }
 0x1e7   :  { %111 = dma.done.wait [#allocation3], 32  }
 0x1e8   :  { %112 = vsyncadd [#allocation3], 4294967264 }
 0x1e9   :  { %80 = vsyncpa [#allocation3], 1 }

</bundles_post_ra>
